<compile_context>
chip_gen: v5e
topology: v5e:2x2
jax: 0.10.0
libtpu: 0.0.40
codegen_flags: <defaults>
</compile_context>

<pallas_src>
import functools
import math

import jax
import jax.numpy as jnp
from jax import lax
from jax.experimental import pallas as pl
from jax.experimental.pallas import tpu as pltpu


# ----------------------------------------------------------------------------
# helpers
# ----------------------------------------------------------------------------
def _pick_tile(dim, target, quanta=(128, 64, 32, 16, 8)):
    """Largest tile <= target that divides dim, preferring 128/8-aligned tiles."""
    if dim <= target:
        return dim
    for q in quanta:
        t = (target // q) * q
        while t >= q:
            if dim % t == 0:
                return t
            t -= q
    # TODO(synk): no aligned divisor <= target; full-dim fallback can blow VMEM
    # for adversarial sizes (documented correctness concern).
    return dim


def _heads_per_group(num_heads, bytes_per_head, budget_bytes):
    """Largest divisor of num_heads whose weight block fits the VMEM budget."""
    best = 1
    for hpg in range(1, num_heads + 1):
        if num_heads % hpg == 0 and hpg * bytes_per_head <= budget_bytes:
            best = hpg
    return best


def _const_spec(shape):
    """Small weight/bias replicated to every grid step (block == full array)."""
    nd = len(shape)
    return pl.BlockSpec(shape, lambda *args: (0,) * nd)


def _cparams(semantics, block_bytes, scratch_bytes=0):
    """Per-call compiler params: estimate VMEM from block sizes, cap for v7x."""
    est = 2 * block_bytes + scratch_bytes          # double-buffered pipeline blocks
    limit = int(min(max(2 * est + (8 << 20), 16 << 20), 48 << 20))
    return pltpu.CompilerParams(dimension_semantics=semantics,
                                vmem_limit_bytes=limit)


def _layernorm(x, gamma, beta, eps=1e-5):
    # torch.nn.LayerNorm over last dim (biased variance), f32 math.
    mean = jnp.mean(x, axis=-1, keepdims=True)
    var = jnp.mean((x - mean) * (x - mean), axis=-1, keepdims=True)
    inv = lax.rsqrt(var + eps)
    return (x - mean) * inv * gamma + beta


# ----------------------------------------------------------------------------
# Pallas kernels
# ----------------------------------------------------------------------------
def qkv_kernel(x_ref, w_ref, b_ref, qkv_ref, *, scale, hpg):
    """q/k/v projection for one (batch, seq-tile, head-group) grid step.

    x_ref  : (1, TS, D)        bf16
    w_ref  : (3, hpg, D, dp)   bf16   (head-major slices of Wq/Wk/Wv^T)
    b_ref  : (3, hpg, 1, dp)   f32
    qkv_ref: (3, hpg, TS, dp)  bf16   (head-major output, q pre-scaled)
    """
    x = x_ref[0]                                          # (TS, D) bf16
    for t in range(3):
        for h in range(hpg):
            r = jnp.dot(x, w_ref[t, h], preferred_element_type=jnp.float32)
            r = r + b_ref[t, h]
            if t == 0:                                    # fold 1/sqrt(dp) into q
                r = r * scale
            qkv_ref[t, h] = r.astype(qkv_ref.dtype)


def flash_attn_kernel(q_ref, k_ref, v_ref, o_ref, m_sc, l_sc, acc_sc):
    ki = pl.program_id(2)

    @pl.when(ki == 0)
    def _():
        m_sc[...] = jnp.full(m_sc.shape, -jnp.inf, jnp.float32)
        l_sc[...] = jnp.zeros(l_sc.shape, jnp.float32)
        acc_sc[...] = jnp.zeros(acc_sc.shape, jnp.float32)

    q = q_ref[0, 0]                                       # (TQ, dp) bf16, pre-scaled
    k = k_ref[0, 0]                                       # (TK, dp) bf16
    # NT contraction straight on the MXU (no explicit transpose / relayout).
    s = lax.dot_general(q, k, (((1,), (1,)), ((), ())),
                        preferred_element_type=jnp.float32)   # (TQ, TK) f32

    m_prev = m_sc[...]
    m_new = jnp.maximum(m_prev, jnp.max(s, axis=-1, keepdims=True))
    alpha = jnp.exp(m_prev - m_new)
    p = jnp.exp(s - m_new)
    l_sc[...] = alpha * l_sc[...] + jnp.sum(p, axis=-1, keepdims=True)
    acc_sc[...] = alpha * acc_sc[...] + jnp.dot(
        p.astype(jnp.bfloat16), v_ref[0, 0], preferred_element_type=jnp.float32)
    m_sc[...] = m_new

    @pl.when(ki == pl.num_programs(2) - 1)
    def _():
        o_ref[0] = (acc_sc[...] * pl.reciprocal(l_sc[...], approx=True)
                    ).astype(o_ref.dtype)


def post_attn_kernel(x_ref, a_ref, wo_ref, bo_ref, g_ref, b_ref, o_ref, acc_ref,
                     *, hpg):
    """Output projection (K-tiled over head groups) + residual + LayerNorm1."""
    hg = pl.program_id(2)

    @pl.when(hg == 0)
    def _():
        acc_ref[...] = jnp.zeros(acc_ref.shape, jnp.float32)

    for h in range(hpg):
        acc_ref[...] += jnp.dot(a_ref[h], wo_ref[h],
                                preferred_element_type=jnp.float32)

    @pl.when(hg == pl.num_programs(2) - 1)
    def _():
        y = x_ref[0].astype(jnp.float32) + acc_ref[...] + bo_ref[...]
        o_ref[0] = _layernorm(y, g_ref[...], b_ref[...]).astype(o_ref.dtype)


def ffn_kernel(x_ref, w1_ref, b1_ref, w2_ref, b2_ref, g_ref, bb_ref,
               o_ref, acc_ref):
    """Linear-ReLU-Linear tiled over the hidden dim + residual + LayerNorm2."""
    fi = pl.program_id(2)

    @pl.when(fi == 0)
    def _():
        acc_ref[...] = jnp.zeros(acc_ref.shape, jnp.float32)

    x = x_ref[0]                                          # (TS, D) bf16, no cast
    h = jnp.dot(x, w1_ref[...], preferred_element_type=jnp.float32) + b1_ref[...]
    h = jnp.maximum(h, 0.0).astype(jnp.bfloat16)
    acc_ref[...] += jnp.dot(h, w2_ref[...], preferred_element_type=jnp.float32)

    @pl.when(fi == pl.num_programs(2) - 1)
    def _():
        y = x_ref[0].astype(jnp.float32) + acc_ref[...] + b2_ref[...]
        o_ref[0] = _layernorm(y, g_ref[...], bb_ref[...]).astype(o_ref.dtype)


def fc_out_kernel(x_ref, w_ref, b_ref, o_ref):
    o_ref[0] = (jnp.dot(x_ref[0], w_ref[...], preferred_element_type=jnp.float32)
                + b_ref[...]).astype(o_ref.dtype)


# ----------------------------------------------------------------------------
# Wrappers calling pallas_call
# ----------------------------------------------------------------------------
def run_qkv_proj(x, wqkv, bqkv, scale, seq_tile):
    B, S, D = x.shape
    _, H, _, dp = wqkv.shape
    hpg = _heads_per_group(H, 3 * D * dp * 2, 4 << 20)    # ~4 MiB weight blocks
    HG = H // hpg
    grid = (B, S // seq_tile, HG)

    x_spec = pl.BlockSpec((1, seq_tile, D), lambda b, s, hg: (b, s, 0))
    w_spec = pl.BlockSpec((3, hpg, D, dp), lambda b, s, hg: (0, hg, 0, 0))
    b_spec = pl.BlockSpec((3, hpg, 1, dp), lambda b, s, hg: (0, hg, 0, 0))
    out_spec = pl.BlockSpec((3, hpg, seq_tile, dp),
                            lambda b, s, hg: (0, b * HG + hg, s, 0))

    block_bytes = (seq_tile * D * 2 + 3 * hpg * D * dp * 2 + 3 * hpg * dp * 4
                   + 3 * hpg * seq_tile * dp * 2)
    return pl.pallas_call(
        functools.partial(qkv_kernel, scale=scale, hpg=hpg),
        grid=grid,
        in_specs=[x_spec, w_spec, b_spec],
        out_specs=out_spec,
        out_shape=jax.ShapeDtypeStruct((3, B * H, S, dp), jnp.bfloat16),
        compiler_params=_cparams(("parallel", "parallel", "parallel"), block_bytes),
    )(x, wqkv, bqkv)


def run_flash_attention(qkv, q_tile, k_tile):
    _, BH, S, dp = qkv.shape
    grid = (BH, S // q_tile, S // k_tile)
    q_spec = pl.BlockSpec((1, 1, q_tile, dp), lambda bh, qi, ki: (0, bh, qi, 0))
    k_spec = pl.BlockSpec((1, 1, k_tile, dp), lambda bh, qi, ki: (1, bh, ki, 0))
    v_spec = pl.BlockSpec((1, 1, k_tile, dp), lambda bh, qi, ki: (2, bh, ki, 0))
    o_spec = pl.BlockSpec((1, q_tile, dp), lambda bh, qi, ki: (bh, qi, 0))

    block_bytes = (2 * q_tile * dp * 2 + 2 * k_tile * dp * 2)
    scratch_bytes = q_tile * (dp + 2) * 4
    return pl.pallas_call(
        flash_attn_kernel,
        grid=grid,
        in_specs=[q_spec, k_spec, v_spec],
        out_specs=o_spec,
        out_shape=jax.ShapeDtypeStruct((BH, S, dp), jnp.bfloat16),
        scratch_shapes=[
            pltpu.VMEM((q_tile, 1), jnp.float32),    # running max
            pltpu.VMEM((q_tile, 1), jnp.float32),    # running sum
            pltpu.VMEM((q_tile, dp), jnp.float32),   # output accumulator
        ],
        compiler_params=_cparams(("parallel", "parallel", "arbitrary"),
                                 block_bytes, scratch_bytes),
    )(qkv, qkv, qkv)


def run_post_attn(x, attn, wo3, bo, g, b, seq_tile):
    B, S, D = x.shape
    H, dp, _ = wo3.shape
    hpg = _heads_per_group(H, dp * D * 2, 4 << 20)
    HG = H // hpg
    grid = (B, S // seq_tile, HG)

    x_spec = pl.BlockSpec((1, seq_tile, D), lambda bb, s, hg: (bb, s, 0))
    a_spec = pl.BlockSpec((hpg, seq_tile, dp), lambda bb, s, hg: (bb * HG + hg, s, 0))
    wo_spec = pl.BlockSpec((hpg, dp, D), lambda bb, s, hg: (hg, 0, 0))
    out_spec = pl.BlockSpec((1, seq_tile, D), lambda bb, s, hg: (bb, s, 0))

    block_bytes = (2 * seq_tile * D * 2 + hpg * seq_tile * dp * 2
                   + hpg * dp * D * 2 + 3 * D * 4)
    scratch_bytes = seq_tile * D * 4
    return pl.pallas_call(
        functools.partial(post_attn_kernel, hpg=hpg),
        grid=grid,
        in_specs=[x_spec, a_spec, wo_spec,
                  _const_spec(bo.shape), _const_spec(g.shape), _const_spec(b.shape)],
        out_specs=out_spec,
        out_shape=jax.ShapeDtypeStruct((B, S, D), jnp.bfloat16),
        scratch_shapes=[pltpu.VMEM((seq_tile, D), jnp.float32)],
        compiler_params=_cparams(("parallel", "parallel", "arbitrary"),
                                 block_bytes, scratch_bytes),
    )(x, attn, wo3, bo, g, b)


def run_ffn(x, w1, b1, w2, b2, g, bb, seq_tile):
    B, S, D = x.shape
    F = w1.shape[1]
    f_tile = _pick_tile(F, 1024)
    grid = (B, S // seq_tile, F // f_tile)
    in_specs = [
        pl.BlockSpec((1, seq_tile, D), lambda b_, s, f: (b_, s, 0)),
        pl.BlockSpec((D, f_tile), lambda b_, s, f: (0, f)),
        pl.BlockSpec((1, f_tile), lambda b_, s, f: (0, f)),
        pl.BlockSpec((f_tile, D), lambda b_, s, f: (f, 0)),
        _const_spec(b2.shape),
        _const_spec(g.shape),
        _const_spec(bb.shape),
    ]
    block_bytes = (2 * seq_tile * D * 2 + D * f_tile * 2 + f_tile * 4
                   + f_tile * D * 2 + 3 * D * 4)
    scratch_bytes = seq_tile * D * 4
    return pl.pallas_call(
        ffn_kernel,
        grid=grid,
        in_specs=in_specs,
        out_specs=pl.BlockSpec((1, seq_tile, D), lambda b_, s, f: (b_, s, 0)),
        out_shape=jax.ShapeDtypeStruct((B, S, D), jnp.bfloat16),
        scratch_shapes=[pltpu.VMEM((seq_tile, D), jnp.float32)],
        compiler_params=_cparams(("parallel", "parallel", "arbitrary"),
                                 block_bytes, scratch_bytes),
    )(x, w1, b1, w2, b2, g, bb)


def run_fc_out(x, w, b, seq_tile):
    B, S, D = x.shape
    V = w.shape[1]
    v_tile = _pick_tile(V, 1024)
    # v outermost: each (D, v_tile) weight block is DMA'd exactly once; the
    # (small) activation tiles are re-streamed instead of the D*V weight.
    grid = (V // v_tile, B, S // seq_tile)
    in_specs = [
        pl.BlockSpec((1, seq_tile, D), lambda v, bb, s: (bb, s, 0)),
        pl.BlockSpec((D, v_tile), lambda v, bb, s: (0, v)),
        pl.BlockSpec((1, v_tile), lambda v, bb, s: (0, v)),
    ]
    block_bytes = (seq_tile * D * 2 + D * v_tile * 2 + v_tile * 4
                   + seq_tile * v_tile * 4)
    return pl.pallas_call(
        fc_out_kernel,
        grid=grid,
        in_specs=in_specs,
        out_specs=pl.BlockSpec((1, seq_tile, v_tile), lambda v, bb, s: (bb, s, v)),
        out_shape=jax.ShapeDtypeStruct((B, S, V), jnp.float32),
        compiler_params=_cparams(("parallel", "parallel", "parallel"), block_bytes),
    )(x, w, b)


# ----------------------------------------------------------------------------
# Parameter init (deterministic, kernel layouts) and full model forward
# ----------------------------------------------------------------------------
def init_params(key, vocab_size, d_model, num_layers, num_heads, dim_ff, max_seq_len):
    keys = jax.random.split(key, 3 + num_layers)
    std = 0.02
    dp = d_model // num_heads

    def w(k, shape):   # matmul weights stored bf16 (MXU operands)
        return (std * jax.random.normal(k, shape, jnp.float32)).astype(jnp.bfloat16)

    params = {
        "tok_emb": std * jax.random.normal(keys[0], (vocab_size, d_model), jnp.float32),
        "pos_emb": std * jax.random.normal(keys[1], (max_seq_len, d_model), jnp.float32),
        # fc_out: torch Linear(d_model, vocab) stored transposed (in, out).
        "fc_w": w(keys[2], (d_model, vocab_size)),
        "fc_b": jnp.zeros((1, vocab_size), jnp.float32),
        "layers": [],
    }
    for l in range(num_layers):
        lk = jax.random.split(keys[3 + l], 6)
        lp = {
            # q/k/v: head-major layout (3, H, D, dp); wqkv[t, h, :, p] is column
            # h*dp+p of W_t^T (torch weight transposed).
            "wqkv": w(lk[0], (3, num_heads, d_model, dp)),
            "bqkv": 0.01 * jax.random.normal(lk[1], (3, num_heads, 1, dp), jnp.float32),
            # output projection: (H, dp, D); wo3.reshape(D, D) == W_o^T.
            "wo3": w(lk[2], (num_heads, dp, d_model)),
            "bo": 0.01 * jax.random.normal(lk[3], (1, d_model), jnp.float32),
            "ln1_g": jnp.ones((1, d_model), jnp.float32),
            "ln1_b": jnp.zeros((1, d_model), jnp.float32),
            "w1": w(lk[4], (d_model, dim_ff)),
            "b1": 0.01 * jax.random.normal(lk[5], (1, dim_ff), jnp.float32),
            "w2": w(jax.random.fold_in(lk[4], 1), (dim_ff, d_model)),
            "b2": jnp.zeros((1, d_model), jnp.float32),
            "ln2_g": jnp.ones((1, d_model), jnp.float32),
            "ln2_b": jnp.zeros((1, d_model), jnp.float32),
        }
        params["layers"].append(lp)
    return params


def gpt_forward(params, tokens, max_seq_len, num_heads):
    B, S0 = tokens.shape
    if S0 != max_seq_len:  # zero-pad tokens like the torch model
        tokens = jnp.concatenate(
            [tokens, jnp.zeros((B, max_seq_len - S0), tokens.dtype)], axis=1)
    S = max_seq_len
    D = params["tok_emb"].shape[1]
    assert D % num_heads == 0
    dp = D // num_heads
    scale = 1.0 / math.sqrt(dp)

    # Embedding lookups are glue (gather) in plain JAX; residual stream bf16.
    x = jnp.take(params["tok_emb"], tokens, axis=0) + params["pos_emb"][None, :S, :]
    x = x.astype(jnp.bfloat16)

    seq_tile = _pick_tile(S, 512)
    kv_tile = _pick_tile(S, 1024)

    for lp in params["layers"]:
        qkv = run_qkv_proj(x, lp["wqkv"], lp["bqkv"], scale, seq_tile)
        o = run_flash_attention(qkv, q_tile=seq_tile, k_tile=kv_tile)
        x = run_post_attn(x, o, lp["wo3"], lp["bo"], lp["ln1_g"], lp["ln1_b"], seq_tile)
        x = run_ffn(x, lp["w1"], lp["b1"], lp["w2"], lp["b2"],
                    lp["ln2_g"], lp["ln2_b"], seq_tile)

    return run_fc_out(x, params["fc_w"], params["fc_b"], seq_tile)


# ----------------------------------------------------------------------------
# Pure-JAX reference (f32, exact softmax) for a sanity check
# ----------------------------------------------------------------------------
def _ref_forward(params, tokens, max_seq_len, num_heads):
    p32 = jax.tree_util.tree_map(lambda a: a.astype(jnp.float32), params)
    B, S0 = tokens.shape
    if S0 != max_seq_len:
        tokens = jnp.concatenate(
            [tokens, jnp.zeros((B, max_seq_len - S0), tokens.dtype)], axis=1)
    S = max_seq_len
    D = p32["tok_emb"].shape[1]
    H = num_heads
    dp = D // H
    x = jnp.take(p32["tok_emb"], tokens, axis=0) + p32["pos_emb"][None, :S, :]

    def ln(z, g, b):
        m = z.mean(-1, keepdims=True)
        var = ((z - m) ** 2).mean(-1, keepdims=True)
        return (z - m) * lax.rsqrt(var + 1e-5) * g + b

    for lp in p32["layers"]:
        wq = jnp.transpose(lp["wqkv"][0], (1, 0, 2)).reshape(D, D)
        wk = jnp.transpose(lp["wqkv"][1], (1, 0, 2)).reshape(D, D)
        wv = jnp.transpose(lp["wqkv"][2], (1, 0, 2)).reshape(D, D)
        bq = lp["bqkv"][0].reshape(1, D)
        bk = lp["bqkv"][1].reshape(1, D)
        bv = lp["bqkv"][2].reshape(1, D)
        wo = lp["wo3"].reshape(D, D)

        q = (x @ wq + bq).reshape(B, S, H, dp).transpose(0, 2, 1, 3)
        k = (x @ wk + bk).reshape(B, S, H, dp).transpose(0, 2, 1, 3)
        v = (x @ wv + bv).reshape(B, S, H, dp).transpose(0, 2, 1, 3)
        scores = jnp.einsum("bhqd,bhkd->bhqk", q, k) / jnp.sqrt(jnp.float32(dp))
        p = jax.nn.softmax(scores, axis=-1)
        o = jnp.einsum("bhqk,bhkd->bhqd", p, v).transpose(0, 2, 1, 3).reshape(B, S, D)
        attn = o @ wo + lp["bo"]

        out1 = ln(x + attn, lp["ln1_g"], lp["ln1_b"])
        ffn = jnp.maximum(out1 @ lp["w1"] + lp["b1"], 0.0) @ lp["w2"] + lp["b2"]
        x = ln(out1 + ffn, lp["ln2_g"], lp["ln2_b"])
    return x @ p32["fc_w"] + p32["fc_b"]


# ----------------------------------------------------------------------------
if __name__ == "__main__":
    vocab_size = 64
    d_model = 32
    num_layers = 2
    num_heads = 4
    dim_feedforward = 64
    max_seq_len = 16
    batch = 2
    seq = 8  # shorter than max_seq_len to exercise the padding branch

    key = jax.random.PRNGKey(0)
    pkey, tkey = jax.random.split(key)
    params = init_params(pkey, vocab_size, d_model, num_layers, num_heads,
                         dim_feedforward, max_seq_len)
    tokens = jax.random.randint(tkey, (batch, seq), 0, vocab_size, dtype=jnp.int32)

    fwd = jax.jit(functools.partial(gpt_forward, max_seq_len=max_seq_len,
                                    num_heads=num_heads))
    logits = fwd(params, tokens)
    logits = jax.block_until_ready(logits)

    ref = _ref_forward(params, tokens, max_seq_len, num_heads)
    assert logits.shape == (batch, max_seq_len, vocab_size)
    # bf16 residual stream / matmul operands + approx reciprocal vs f32 reference
    assert jnp.allclose(logits, ref, atol=3e-2, rtol=3e-2), "mismatch vs reference"

    print("KERNEL_OK")
</pallas_src>

<mosaic_0001>
module attributes {stable_mosaic.version = 11 : i64} {
  func.func @qkv_kernel(%arg0: i32, %arg1: i32, %arg2: i32, %arg3: memref<1x16x32xbf16, #tpu.memory_space<vmem>>, %arg4: memref<3x4x32x8xbf16, #tpu.memory_space<vmem>>, %arg5: memref<3x4x1x8xf32, #tpu.memory_space<vmem>>, %arg6: memref<3x4x16x8xbf16, #tpu.memory_space<vmem>>) attributes {dimension_semantics = [#tpu.dimension_semantics<parallel>, #tpu.dimension_semantics<parallel>, #tpu.dimension_semantics<parallel>], iteration_bounds = array<i64: 2, 1, 1>, scalar_prefetch = 0 : i64, scratch_operands = 0 : i64, tpu.core_type = #tpu.core_type<tc>, window_params = [{transform_indices = @transform_0, window_bounds = array<i64: 1, 16, 32>}, {transform_indices = @transform_1, window_bounds = array<i64: 3, 4, 32, 8>}, {transform_indices = @transform_2, window_bounds = array<i64: 3, 4, 1, 8>}, {transform_indices = @transform_3, window_bounds = array<i64: 3, 4, 16, 8>}]} {
    %c0 = arith.constant 0 : index
    %c0_0 = arith.constant 0 : index
    %c0_1 = arith.constant 0 : index
    %0 = vector.load %arg3[%c0, %c0_0, %c0_1] : memref<1x16x32xbf16, #tpu.memory_space<vmem>>, vector<1x16x32xbf16>
    %1 = vector.shape_cast %0 : vector<1x16x32xbf16> to vector<16x32xbf16>
    %c0_2 = arith.constant 0 : index
    %c0_3 = arith.constant 0 : index
    %c0_4 = arith.constant 0 : index
    %c0_5 = arith.constant 0 : index
    %2 = vector.load %arg4[%c0_2, %c0_3, %c0_4, %c0_5] : memref<3x4x32x8xbf16, #tpu.memory_space<vmem>>, vector<1x1x32x8xbf16>
    %3 = vector.shape_cast %2 : vector<1x1x32x8xbf16> to vector<32x8xbf16>
    %cst = arith.constant dense<0.000000e+00> : vector<16x8xf32>
    %4 = tpu.matmul %1, %3, %cst {dimension_numbers = #tpu.dot_dimension_numbers<[1], [0], [0], [1], [0, 0, 1, 1], [], []>} : vector<16x32xbf16>, vector<32x8xbf16>, vector<16x8xf32> -> vector<16x8xf32>
    %c0_6 = arith.constant 0 : index
    %c0_7 = arith.constant 0 : index
    %c0_8 = arith.constant 0 : index
    %c0_9 = arith.constant 0 : index
    %5 = vector.load %arg5[%c0_6, %c0_7, %c0_8, %c0_9] : memref<3x4x1x8xf32, #tpu.memory_space<vmem>>, vector<1x1x1x8xf32>
    %6 = vector.shape_cast %5 : vector<1x1x1x8xf32> to vector<1x8xf32>
    %7 = vector.broadcast %6 : vector<1x8xf32> to vector<16x8xf32>
    %8 = arith.addf %4, %7 : vector<16x8xf32>
    %cst_10 = arith.constant 0.353553385 : f32
    %9 = vector.broadcast %cst_10 : f32 to vector<16x8xf32>
    %10 = arith.mulf %8, %9 : vector<16x8xf32>
    %11 = arith.truncf %10 : vector<16x8xf32> to vector<16x8xbf16>
    %c0_11 = arith.constant 0 : index
    %c0_12 = arith.constant 0 : index
    %c0_13 = arith.constant 0 : index
    %c0_14 = arith.constant 0 : index
    %12 = vector.load %arg6[%c0_11, %c0_12, %c0_13, %c0_14] : memref<3x4x16x8xbf16, #tpu.memory_space<vmem>>, vector<1x1x16x8xbf16>
    %13 = vector.shape_cast %12 : vector<1x1x16x8xbf16> to vector<16x8xbf16>
    %14 = vector.shape_cast %11 : vector<16x8xbf16> to vector<1x1x16x8xbf16>
    tpu.vector_store %arg6[%c0_11, %c0_12, %c0_13, %c0_14], %14 {strides = array<i32>} : memref<3x4x16x8xbf16, #tpu.memory_space<vmem>>, vector<1x1x16x8xbf16>,
    %c0_15 = arith.constant 0 : index
    %c1 = arith.constant 1 : index
    %c0_16 = arith.constant 0 : index
    %c0_17 = arith.constant 0 : index
    %15 = vector.load %arg4[%c0_15, %c1, %c0_16, %c0_17] : memref<3x4x32x8xbf16, #tpu.memory_space<vmem>>, vector<1x1x32x8xbf16>
    %16 = vector.shape_cast %15 : vector<1x1x32x8xbf16> to vector<32x8xbf16>
    %cst_18 = arith.constant dense<0.000000e+00> : vector<16x8xf32>
    %17 = tpu.matmul %1, %16, %cst_18 {dimension_numbers = #tpu.dot_dimension_numbers<[1], [0], [0], [1], [0, 0, 1, 1], [], []>} : vector<16x32xbf16>, vector<32x8xbf16>, vector<16x8xf32> -> vector<16x8xf32>
    %c0_19 = arith.constant 0 : index
    %c1_20 = arith.constant 1 : index
    %c0_21 = arith.constant 0 : index
    %c0_22 = arith.constant 0 : index
    %18 = vector.load %arg5[%c0_19, %c1_20, %c0_21, %c0_22] : memref<3x4x1x8xf32, #tpu.memory_space<vmem>>, vector<1x1x1x8xf32>
    %19 = vector.shape_cast %18 : vector<1x1x1x8xf32> to vector<1x8xf32>
    %20 = vector.broadcast %19 : vector<1x8xf32> to vector<16x8xf32>
    %21 = arith.addf %17, %20 : vector<16x8xf32>
    %cst_23 = arith.constant 0.353553385 : f32
    %22 = vector.broadcast %cst_23 : f32 to vector<16x8xf32>
    %23 = arith.mulf %21, %22 : vector<16x8xf32>
    %24 = arith.truncf %23 : vector<16x8xf32> to vector<16x8xbf16>
    %c0_24 = arith.constant 0 : index
    %c1_25 = arith.constant 1 : index
    %c0_26 = arith.constant 0 : index
    %c0_27 = arith.constant 0 : index
    %25 = vector.load %arg6[%c0_24, %c1_25, %c0_26, %c0_27] : memref<3x4x16x8xbf16, #tpu.memory_space<vmem>>, vector<1x1x16x8xbf16>
    %26 = vector.shape_cast %25 : vector<1x1x16x8xbf16> to vector<16x8xbf16>
    %27 = vector.shape_cast %24 : vector<16x8xbf16> to vector<1x1x16x8xbf16>
    tpu.vector_store %arg6[%c0_24, %c1_25, %c0_26, %c0_27], %27 {strides = array<i32>} : memref<3x4x16x8xbf16, #tpu.memory_space<vmem>>, vector<1x1x16x8xbf16>,
    %c0_28 = arith.constant 0 : index
    %c2 = arith.constant 2 : index
    %c0_29 = arith.constant 0 : index
    %c0_30 = arith.constant 0 : index
    %28 = vector.load %arg4[%c0_28, %c2, %c0_29, %c0_30] : memref<3x4x32x8xbf16, #tpu.memory_space<vmem>>, vector<1x1x32x8xbf16>
    %29 = vector.shape_cast %28 : vector<1x1x32x8xbf16> to vector<32x8xbf16>
    %cst_31 = arith.constant dense<0.000000e+00> : vector<16x8xf32>
    %30 = tpu.matmul %1, %29, %cst_31 {dimension_numbers = #tpu.dot_dimension_numbers<[1], [0], [0], [1], [0, 0, 1, 1], [], []>} : vector<16x32xbf16>, vector<32x8xbf16>, vector<16x8xf32> -> vector<16x8xf32>
    %c0_32 = arith.constant 0 : index
    %c2_33 = arith.constant 2 : index
    %c0_34 = arith.constant 0 : index
    %c0_35 = arith.constant 0 : index
    %31 = vector.load %arg5[%c0_32, %c2_33, %c0_34, %c0_35] : memref<3x4x1x8xf32, #tpu.memory_space<vmem>>, vector<1x1x1x8xf32>
    %32 = vector.shape_cast %31 : vector<1x1x1x8xf32> to vector<1x8xf32>
    %33 = vector.broadcast %32 : vector<1x8xf32> to vector<16x8xf32>
    %34 = arith.addf %30, %33 : vector<16x8xf32>
    %cst_36 = arith.constant 0.353553385 : f32
    %35 = vector.broadcast %cst_36 : f32 to vector<16x8xf32>
    %36 = arith.mulf %34, %35 : vector<16x8xf32>
    %37 = arith.truncf %36 : vector<16x8xf32> to vector<16x8xbf16>
    %c0_37 = arith.constant 0 : index
    %c2_38 = arith.constant 2 : index
    %c0_39 = arith.constant 0 : index
    %c0_40 = arith.constant 0 : index
    %38 = vector.load %arg6[%c0_37, %c2_38, %c0_39, %c0_40] : memref<3x4x16x8xbf16, #tpu.memory_space<vmem>>, vector<1x1x16x8xbf16>
    %39 = vector.shape_cast %38 : vector<1x1x16x8xbf16> to vector<16x8xbf16>
    %40 = vector.shape_cast %37 : vector<16x8xbf16> to vector<1x1x16x8xbf16>
    tpu.vector_store %arg6[%c0_37, %c2_38, %c0_39, %c0_40], %40 {strides = array<i32>} : memref<3x4x16x8xbf16, #tpu.memory_space<vmem>>, vector<1x1x16x8xbf16>,
    %c0_41 = arith.constant 0 : index
    %c3 = arith.constant 3 : index
    %c0_42 = arith.constant 0 : index
    %c0_43 = arith.constant 0 : index
    %41 = vector.load %arg4[%c0_41, %c3, %c0_42, %c0_43] : memref<3x4x32x8xbf16, #tpu.memory_space<vmem>>, vector<1x1x32x8xbf16>
    %42 = vector.shape_cast %41 : vector<1x1x32x8xbf16> to vector<32x8xbf16>
    %cst_44 = arith.constant dense<0.000000e+00> : vector<16x8xf32>
    %43 = tpu.matmul %1, %42, %cst_44 {dimension_numbers = #tpu.dot_dimension_numbers<[1], [0], [0], [1], [0, 0, 1, 1], [], []>} : vector<16x32xbf16>, vector<32x8xbf16>, vector<16x8xf32> -> vector<16x8xf32>
    %c0_45 = arith.constant 0 : index
    %c3_46 = arith.constant 3 : index
    %c0_47 = arith.constant 0 : index
    %c0_48 = arith.constant 0 : index
    %44 = vector.load %arg5[%c0_45, %c3_46, %c0_47, %c0_48] : memref<3x4x1x8xf32, #tpu.memory_space<vmem>>, vector<1x1x1x8xf32>
    %45 = vector.shape_cast %44 : vector<1x1x1x8xf32> to vector<1x8xf32>
    %46 = vector.broadcast %45 : vector<1x8xf32> to vector<16x8xf32>
    %47 = arith.addf %43, %46 : vector<16x8xf32>
    %cst_49 = arith.constant 0.353553385 : f32
    %48 = vector.broadcast %cst_49 : f32 to vector<16x8xf32>
    %49 = arith.mulf %47, %48 : vector<16x8xf32>
    %50 = arith.truncf %49 : vector<16x8xf32> to vector<16x8xbf16>
    %c0_50 = arith.constant 0 : index
    %c3_51 = arith.constant 3 : index
    %c0_52 = arith.constant 0 : index
    %c0_53 = arith.constant 0 : index
    %51 = vector.load %arg6[%c0_50, %c3_51, %c0_52, %c0_53] : memref<3x4x16x8xbf16, #tpu.memory_space<vmem>>, vector<1x1x16x8xbf16>
    %52 = vector.shape_cast %51 : vector<1x1x16x8xbf16> to vector<16x8xbf16>
    %53 = vector.shape_cast %50 : vector<16x8xbf16> to vector<1x1x16x8xbf16>
    tpu.vector_store %arg6[%c0_50, %c3_51, %c0_52, %c0_53], %53 {strides = array<i32>} : memref<3x4x16x8xbf16, #tpu.memory_space<vmem>>, vector<1x1x16x8xbf16>,
    %c1_54 = arith.constant 1 : index
    %c0_55 = arith.constant 0 : index
    %c0_56 = arith.constant 0 : index
    %c0_57 = arith.constant 0 : index
    %54 = vector.load %arg4[%c1_54, %c0_55, %c0_56, %c0_57] : memref<3x4x32x8xbf16, #tpu.memory_space<vmem>>, vector<1x1x32x8xbf16>
    %55 = vector.shape_cast %54 : vector<1x1x32x8xbf16> to vector<32x8xbf16>
    %cst_58 = arith.constant dense<0.000000e+00> : vector<16x8xf32>
    %56 = tpu.matmul %1, %55, %cst_58 {dimension_numbers = #tpu.dot_dimension_numbers<[1], [0], [0], [1], [0, 0, 1, 1], [], []>} : vector<16x32xbf16>, vector<32x8xbf16>, vector<16x8xf32> -> vector<16x8xf32>
    %c1_59 = arith.constant 1 : index
    %c0_60 = arith.constant 0 : index
    %c0_61 = arith.constant 0 : index
    %c0_62 = arith.constant 0 : index
    %57 = vector.load %arg5[%c1_59, %c0_60, %c0_61, %c0_62] : memref<3x4x1x8xf32, #tpu.memory_space<vmem>>, vector<1x1x1x8xf32>
    %58 = vector.shape_cast %57 : vector<1x1x1x8xf32> to vector<1x8xf32>
    %59 = vector.broadcast %58 : vector<1x8xf32> to vector<16x8xf32>
    %60 = arith.addf %56, %59 : vector<16x8xf32>
    %61 = arith.truncf %60 : vector<16x8xf32> to vector<16x8xbf16>
    %c1_63 = arith.constant 1 : index
    %c0_64 = arith.constant 0 : index
    %c0_65 = arith.constant 0 : index
    %c0_66 = arith.constant 0 : index
    %62 = vector.load %arg6[%c1_63, %c0_64, %c0_65, %c0_66] : memref<3x4x16x8xbf16, #tpu.memory_space<vmem>>, vector<1x1x16x8xbf16>
    %63 = vector.shape_cast %62 : vector<1x1x16x8xbf16> to vector<16x8xbf16>
    %64 = vector.shape_cast %61 : vector<16x8xbf16> to vector<1x1x16x8xbf16>
    tpu.vector_store %arg6[%c1_63, %c0_64, %c0_65, %c0_66], %64 {strides = array<i32>} : memref<3x4x16x8xbf16, #tpu.memory_space<vmem>>, vector<1x1x16x8xbf16>,
    %c1_67 = arith.constant 1 : index
    %c1_68 = arith.constant 1 : index
    %c0_69 = arith.constant 0 : index
    %c0_70 = arith.constant 0 : index
    %65 = vector.load %arg4[%c1_67, %c1_68, %c0_69, %c0_70] : memref<3x4x32x8xbf16, #tpu.memory_space<vmem>>, vector<1x1x32x8xbf16>
    %66 = vector.shape_cast %65 : vector<1x1x32x8xbf16> to vector<32x8xbf16>
    %cst_71 = arith.constant dense<0.000000e+00> : vector<16x8xf32>
    %67 = tpu.matmul %1, %66, %cst_71 {dimension_numbers = #tpu.dot_dimension_numbers<[1], [0], [0], [1], [0, 0, 1, 1], [], []>} : vector<16x32xbf16>, vector<32x8xbf16>, vector<16x8xf32> -> vector<16x8xf32>
    %c1_72 = arith.constant 1 : index
    %c1_73 = arith.constant 1 : index
    %c0_74 = arith.constant 0 : index
    %c0_75 = arith.constant 0 : index
    %68 = vector.load %arg5[%c1_72, %c1_73, %c0_74, %c0_75] : memref<3x4x1x8xf32, #tpu.memory_space<vmem>>, vector<1x1x1x8xf32>
    %69 = vector.shape_cast %68 : vector<1x1x1x8xf32> to vector<1x8xf32>
    %70 = vector.broadcast %69 : vector<1x8xf32> to vector<16x8xf32>
    %71 = arith.addf %67, %70 : vector<16x8xf32>
    %72 = arith.truncf %71 : vector<16x8xf32> to vector<16x8xbf16>
    %c1_76 = arith.constant 1 : index
    %c1_77 = arith.constant 1 : index
    %c0_78 = arith.constant 0 : index
    %c0_79 = arith.constant 0 : index
    %73 = vector.load %arg6[%c1_76, %c1_77, %c0_78, %c0_79] : memref<3x4x16x8xbf16, #tpu.memory_space<vmem>>, vector<1x1x16x8xbf16>
    %74 = vector.shape_cast %73 : vector<1x1x16x8xbf16> to vector<16x8xbf16>
    %75 = vector.shape_cast %72 : vector<16x8xbf16> to vector<1x1x16x8xbf16>
    tpu.vector_store %arg6[%c1_76, %c1_77, %c0_78, %c0_79], %75 {strides = array<i32>} : memref<3x4x16x8xbf16, #tpu.memory_space<vmem>>, vector<1x1x16x8xbf16>,
    %c1_80 = arith.constant 1 : index
    %c2_81 = arith.constant 2 : index
    %c0_82 = arith.constant 0 : index
    %c0_83 = arith.constant 0 : index
    %76 = vector.load %arg4[%c1_80, %c2_81, %c0_82, %c0_83] : memref<3x4x32x8xbf16, #tpu.memory_space<vmem>>, vector<1x1x32x8xbf16>
    %77 = vector.shape_cast %76 : vector<1x1x32x8xbf16> to vector<32x8xbf16>
    %cst_84 = arith.constant dense<0.000000e+00> : vector<16x8xf32>
    %78 = tpu.matmul %1, %77, %cst_84 {dimension_numbers = #tpu.dot_dimension_numbers<[1], [0], [0], [1], [0, 0, 1, 1], [], []>} : vector<16x32xbf16>, vector<32x8xbf16>, vector<16x8xf32> -> vector<16x8xf32>
    %c1_85 = arith.constant 1 : index
    %c2_86 = arith.constant 2 : index
    %c0_87 = arith.constant 0 : index
    %c0_88 = arith.constant 0 : index
    %79 = vector.load %arg5[%c1_85, %c2_86, %c0_87, %c0_88] : memref<3x4x1x8xf32, #tpu.memory_space<vmem>>, vector<1x1x1x8xf32>
    %80 = vector.shape_cast %79 : vector<1x1x1x8xf32> to vector<1x8xf32>
    %81 = vector.broadcast %80 : vector<1x8xf32> to vector<16x8xf32>
    %82 = arith.addf %78, %81 : vector<16x8xf32>
    %83 = arith.truncf %82 : vector<16x8xf32> to vector<16x8xbf16>
    %c1_89 = arith.constant 1 : index
    %c2_90 = arith.constant 2 : index
    %c0_91 = arith.constant 0 : index
    %c0_92 = arith.constant 0 : index
    %84 = vector.load %arg6[%c1_89, %c2_90, %c0_91, %c0_92] : memref<3x4x16x8xbf16, #tpu.memory_space<vmem>>, vector<1x1x16x8xbf16>
    %85 = vector.shape_cast %84 : vector<1x1x16x8xbf16> to vector<16x8xbf16>
    %86 = vector.shape_cast %83 : vector<16x8xbf16> to vector<1x1x16x8xbf16>
    tpu.vector_store %arg6[%c1_89, %c2_90, %c0_91, %c0_92], %86 {strides = array<i32>} : memref<3x4x16x8xbf16, #tpu.memory_space<vmem>>, vector<1x1x16x8xbf16>,
    %c1_93 = arith.constant 1 : index
    %c3_94 = arith.constant 3 : index
    %c0_95 = arith.constant 0 : index
    %c0_96 = arith.constant 0 : index
    %87 = vector.load %arg4[%c1_93, %c3_94, %c0_95, %c0_96] : memref<3x4x32x8xbf16, #tpu.memory_space<vmem>>, vector<1x1x32x8xbf16>
    %88 = vector.shape_cast %87 : vector<1x1x32x8xbf16> to vector<32x8xbf16>
    %cst_97 = arith.constant dense<0.000000e+00> : vector<16x8xf32>
    %89 = tpu.matmul %1, %88, %cst_97 {dimension_numbers = #tpu.dot_dimension_numbers<[1], [0], [0], [1], [0, 0, 1, 1], [], []>} : vector<16x32xbf16>, vector<32x8xbf16>, vector<16x8xf32> -> vector<16x8xf32>
    %c1_98 = arith.constant 1 : index
    %c3_99 = arith.constant 3 : index
    %c0_100 = arith.constant 0 : index
    %c0_101 = arith.constant 0 : index
    %90 = vector.load %arg5[%c1_98, %c3_99, %c0_100, %c0_101] : memref<3x4x1x8xf32, #tpu.memory_space<vmem>>, vector<1x1x1x8xf32>
    %91 = vector.shape_cast %90 : vector<1x1x1x8xf32> to vector<1x8xf32>
    %92 = vector.broadcast %91 : vector<1x8xf32> to vector<16x8xf32>
    %93 = arith.addf %89, %92 : vector<16x8xf32>
    %94 = arith.truncf %93 : vector<16x8xf32> to vector<16x8xbf16>
    %c1_102 = arith.constant 1 : index
    %c3_103 = arith.constant 3 : index
    %c0_104 = arith.constant 0 : index
    %c0_105 = arith.constant 0 : index
    %95 = vector.load %arg6[%c1_102, %c3_103, %c0_104, %c0_105] : memref<3x4x16x8xbf16, #tpu.memory_space<vmem>>, vector<1x1x16x8xbf16>
    %96 = vector.shape_cast %95 : vector<1x1x16x8xbf16> to vector<16x8xbf16>
    %97 = vector.shape_cast %94 : vector<16x8xbf16> to vector<1x1x16x8xbf16>
    tpu.vector_store %arg6[%c1_102, %c3_103, %c0_104, %c0_105], %97 {strides = array<i32>} : memref<3x4x16x8xbf16, #tpu.memory_space<vmem>>, vector<1x1x16x8xbf16>,
    %c2_106 = arith.constant 2 : index
    %c0_107 = arith.constant 0 : index
    %c0_108 = arith.constant 0 : index
    %c0_109 = arith.constant 0 : index
    %98 = vector.load %arg4[%c2_106, %c0_107, %c0_108, %c0_109] : memref<3x4x32x8xbf16, #tpu.memory_space<vmem>>, vector<1x1x32x8xbf16>
    %99 = vector.shape_cast %98 : vector<1x1x32x8xbf16> to vector<32x8xbf16>
    %cst_110 = arith.constant dense<0.000000e+00> : vector<16x8xf32>
    %100 = tpu.matmul %1, %99, %cst_110 {dimension_numbers = #tpu.dot_dimension_numbers<[1], [0], [0], [1], [0, 0, 1, 1], [], []>} : vector<16x32xbf16>, vector<32x8xbf16>, vector<16x8xf32> -> vector<16x8xf32>
    %c2_111 = arith.constant 2 : index
    %c0_112 = arith.constant 0 : index
    %c0_113 = arith.constant 0 : index
    %c0_114 = arith.constant 0 : index
    %101 = vector.load %arg5[%c2_111, %c0_112, %c0_113, %c0_114] : memref<3x4x1x8xf32, #tpu.memory_space<vmem>>, vector<1x1x1x8xf32>
    %102 = vector.shape_cast %101 : vector<1x1x1x8xf32> to vector<1x8xf32>
    %103 = vector.broadcast %102 : vector<1x8xf32> to vector<16x8xf32>
    %104 = arith.addf %100, %103 : vector<16x8xf32>
    %105 = arith.truncf %104 : vector<16x8xf32> to vector<16x8xbf16>
    %c2_115 = arith.constant 2 : index
    %c0_116 = arith.constant 0 : index
    %c0_117 = arith.constant 0 : index
    %c0_118 = arith.constant 0 : index
    %106 = vector.load %arg6[%c2_115, %c0_116, %c0_117, %c0_118] : memref<3x4x16x8xbf16, #tpu.memory_space<vmem>>, vector<1x1x16x8xbf16>
    %107 = vector.shape_cast %106 : vector<1x1x16x8xbf16> to vector<16x8xbf16>
    %108 = vector.shape_cast %105 : vector<16x8xbf16> to vector<1x1x16x8xbf16>
    tpu.vector_store %arg6[%c2_115, %c0_116, %c0_117, %c0_118], %108 {strides = array<i32>} : memref<3x4x16x8xbf16, #tpu.memory_space<vmem>>, vector<1x1x16x8xbf16>,
    %c2_119 = arith.constant 2 : index
    %c1_120 = arith.constant 1 : index
    %c0_121 = arith.constant 0 : index
    %c0_122 = arith.constant 0 : index
    %109 = vector.load %arg4[%c2_119, %c1_120, %c0_121, %c0_122] : memref<3x4x32x8xbf16, #tpu.memory_space<vmem>>, vector<1x1x32x8xbf16>
    %110 = vector.shape_cast %109 : vector<1x1x32x8xbf16> to vector<32x8xbf16>
    %cst_123 = arith.constant dense<0.000000e+00> : vector<16x8xf32>
    %111 = tpu.matmul %1, %110, %cst_123 {dimension_numbers = #tpu.dot_dimension_numbers<[1], [0], [0], [1], [0, 0, 1, 1], [], []>} : vector<16x32xbf16>, vector<32x8xbf16>, vector<16x8xf32> -> vector<16x8xf32>
    %c2_124 = arith.constant 2 : index
    %c1_125 = arith.constant 1 : index
    %c0_126 = arith.constant 0 : index
    %c0_127 = arith.constant 0 : index
    %112 = vector.load %arg5[%c2_124, %c1_125, %c0_126, %c0_127] : memref<3x4x1x8xf32, #tpu.memory_space<vmem>>, vector<1x1x1x8xf32>
    %113 = vector.shape_cast %112 : vector<1x1x1x8xf32> to vector<1x8xf32>
    %114 = vector.broadcast %113 : vector<1x8xf32> to vector<16x8xf32>
    %115 = arith.addf %111, %114 : vector<16x8xf32>
    %116 = arith.truncf %115 : vector<16x8xf32> to vector<16x8xbf16>
    %c2_128 = arith.constant 2 : index
    %c1_129 = arith.constant 1 : index
    %c0_130 = arith.constant 0 : index
    %c0_131 = arith.constant 0 : index
    %117 = vector.load %arg6[%c2_128, %c1_129, %c0_130, %c0_131] : memref<3x4x16x8xbf16, #tpu.memory_space<vmem>>, vector<1x1x16x8xbf16>
    %118 = vector.shape_cast %117 : vector<1x1x16x8xbf16> to vector<16x8xbf16>
    %119 = vector.shape_cast %116 : vector<16x8xbf16> to vector<1x1x16x8xbf16>
    tpu.vector_store %arg6[%c2_128, %c1_129, %c0_130, %c0_131], %119 {strides = array<i32>} : memref<3x4x16x8xbf16, #tpu.memory_space<vmem>>, vector<1x1x16x8xbf16>,
    %c2_132 = arith.constant 2 : index
    %c2_133 = arith.constant 2 : index
    %c0_134 = arith.constant 0 : index
    %c0_135 = arith.constant 0 : index
    %120 = vector.load %arg4[%c2_132, %c2_133, %c0_134, %c0_135] : memref<3x4x32x8xbf16, #tpu.memory_space<vmem>>, vector<1x1x32x8xbf16>
    %121 = vector.shape_cast %120 : vector<1x1x32x8xbf16> to vector<32x8xbf16>
    %cst_136 = arith.constant dense<0.000000e+00> : vector<16x8xf32>
    %122 = tpu.matmul %1, %121, %cst_136 {dimension_numbers = #tpu.dot_dimension_numbers<[1], [0], [0], [1], [0, 0, 1, 1], [], []>} : vector<16x32xbf16>, vector<32x8xbf16>, vector<16x8xf32> -> vector<16x8xf32>
    %c2_137 = arith.constant 2 : index
    %c2_138 = arith.constant 2 : index
    %c0_139 = arith.constant 0 : index
    %c0_140 = arith.constant 0 : index
    %123 = vector.load %arg5[%c2_137, %c2_138, %c0_139, %c0_140] : memref<3x4x1x8xf32, #tpu.memory_space<vmem>>, vector<1x1x1x8xf32>
    %124 = vector.shape_cast %123 : vector<1x1x1x8xf32> to vector<1x8xf32>
    %125 = vector.broadcast %124 : vector<1x8xf32> to vector<16x8xf32>
    %126 = arith.addf %122, %125 : vector<16x8xf32>
    %127 = arith.truncf %126 : vector<16x8xf32> to vector<16x8xbf16>
    %c2_141 = arith.constant 2 : index
    %c2_142 = arith.constant 2 : index
    %c0_143 = arith.constant 0 : index
    %c0_144 = arith.constant 0 : index
    %128 = vector.load %arg6[%c2_141, %c2_142, %c0_143, %c0_144] : memref<3x4x16x8xbf16, #tpu.memory_space<vmem>>, vector<1x1x16x8xbf16>
    %129 = vector.shape_cast %128 : vector<1x1x16x8xbf16> to vector<16x8xbf16>
    %130 = vector.shape_cast %127 : vector<16x8xbf16> to vector<1x1x16x8xbf16>
    tpu.vector_store %arg6[%c2_141, %c2_142, %c0_143, %c0_144], %130 {strides = array<i32>} : memref<3x4x16x8xbf16, #tpu.memory_space<vmem>>, vector<1x1x16x8xbf16>,
    %c2_145 = arith.constant 2 : index
    %c3_146 = arith.constant 3 : index
    %c0_147 = arith.constant 0 : index
    %c0_148 = arith.constant 0 : index
    %131 = vector.load %arg4[%c2_145, %c3_146, %c0_147, %c0_148] : memref<3x4x32x8xbf16, #tpu.memory_space<vmem>>, vector<1x1x32x8xbf16>
    %132 = vector.shape_cast %131 : vector<1x1x32x8xbf16> to vector<32x8xbf16>
    %cst_149 = arith.constant dense<0.000000e+00> : vector<16x8xf32>
    %133 = tpu.matmul %1, %132, %cst_149 {dimension_numbers = #tpu.dot_dimension_numbers<[1], [0], [0], [1], [0, 0, 1, 1], [], []>} : vector<16x32xbf16>, vector<32x8xbf16>, vector<16x8xf32> -> vector<16x8xf32>
    %c2_150 = arith.constant 2 : index
    %c3_151 = arith.constant 3 : index
    %c0_152 = arith.constant 0 : index
    %c0_153 = arith.constant 0 : index
    %134 = vector.load %arg5[%c2_150, %c3_151, %c0_152, %c0_153] : memref<3x4x1x8xf32, #tpu.memory_space<vmem>>, vector<1x1x1x8xf32>
    %135 = vector.shape_cast %134 : vector<1x1x1x8xf32> to vector<1x8xf32>
    %136 = vector.broadcast %135 : vector<1x8xf32> to vector<16x8xf32>
    %137 = arith.addf %133, %136 : vector<16x8xf32>
    %138 = arith.truncf %137 : vector<16x8xf32> to vector<16x8xbf16>
    %c2_154 = arith.constant 2 : index
    %c3_155 = arith.constant 3 : index
    %c0_156 = arith.constant 0 : index
    %c0_157 = arith.constant 0 : index
    %139 = vector.load %arg6[%c2_154, %c3_155, %c0_156, %c0_157] : memref<3x4x16x8xbf16, #tpu.memory_space<vmem>>, vector<1x1x16x8xbf16>
    %140 = vector.shape_cast %139 : vector<1x1x16x8xbf16> to vector<16x8xbf16>
    %141 = vector.shape_cast %138 : vector<16x8xbf16> to vector<1x1x16x8xbf16>
    tpu.vector_store %arg6[%c2_154, %c3_155, %c0_156, %c0_157], %141 {strides = array<i32>} : memref<3x4x16x8xbf16, #tpu.memory_space<vmem>>, vector<1x1x16x8xbf16>,
    return
  }
  func.func @transform_0(%arg0: i32, %arg1: i32, %arg2: i32) -> (i32, i32, i32) {
    %c0_i32 = arith.constant 0 : i32
    %c0_i32_0 = arith.constant 0 : i32
    return %arg0, %arg1, %c0_i32 : i32, i32, i32
  }
  func.func @transform_1(%arg0: i32, %arg1: i32, %arg2: i32) -> (i32, i32, i32, i32) {
    %c0_i32 = arith.constant 0 : i32
    %c0_i32_0 = arith.constant 0 : i32
    %c0_i32_1 = arith.constant 0 : i32
    %c0_i32_2 = arith.constant 0 : i32
    return %c0_i32, %arg2, %c0_i32_0, %c0_i32_1 : i32, i32, i32, i32
  }
  func.func @transform_2(%arg0: i32, %arg1: i32, %arg2: i32) -> (i32, i32, i32, i32) {
    %c0_i32 = arith.constant 0 : i32
    %c0_i32_0 = arith.constant 0 : i32
    %c0_i32_1 = arith.constant 0 : i32
    %c0_i32_2 = arith.constant 0 : i32
    return %c0_i32, %arg2, %c0_i32_0, %c0_i32_1 : i32, i32, i32, i32
  }
  func.func @transform_3(%arg0: i32, %arg1: i32, %arg2: i32) -> (i32, i32, i32, i32) {
    %c1_i32 = arith.constant 1 : i32
    %0 = arith.muli %arg0, %c1_i32 : i32
    %1 = arith.addi %0, %arg2 : i32
    %c0_i32 = arith.constant 0 : i32
    %c0_i32_0 = arith.constant 0 : i32
    %c0_i32_1 = arith.constant 0 : i32
    return %c0_i32, %1, %arg1, %c0_i32_0 : i32, i32, i32, i32
  }
}

module attributes {stable_mosaic.version = 11 : i64} {
  func.func @post_attn_kernel(%arg0: i32, %arg1: i32, %arg2: i32, %arg3: memref<1x16x32xbf16, #tpu.memory_space<vmem>>, %arg4: memref<4x16x8xbf16, #tpu.memory_space<vmem>>, %arg5: memref<4x8x32xbf16, #tpu.memory_space<vmem>>, %arg6: memref<1x32xf32, #tpu.memory_space<vmem>>, %arg7: memref<1x32xf32, #tpu.memory_space<vmem>>, %arg8: memref<1x32xf32, #tpu.memory_space<vmem>>, %arg9: memref<1x16x32xbf16, #tpu.memory_space<vmem>>, %arg10: memref<16x32xf32, #tpu.memory_space<vmem>>) attributes {dimension_semantics = [#tpu.dimension_semantics<parallel>, #tpu.dimension_semantics<parallel>, #tpu.dimension_semantics<arbitrary>], iteration_bounds = array<i64: 2, 1, 1>, scalar_prefetch = 0 : i64, scratch_operands = 1 : i64, tpu.core_type = #tpu.core_type<tc>, window_params = [{transform_indices = @transform_0, window_bounds = array<i64: 1, 16, 32>}, {transform_indices = @transform_1, window_bounds = array<i64: 4, 16, 8>}, {transform_indices = @transform_2, window_bounds = array<i64: 4, 8, 32>}, {pipeline_mode = #tpu.pipeline_mode<synchronous>, transform_indices = @transform_3, window_bounds = array<i64: 1, 32>}, {pipeline_mode = #tpu.pipeline_mode<synchronous>, transform_indices = @transform_4, window_bounds = array<i64: 1, 32>}, {pipeline_mode = #tpu.pipeline_mode<synchronous>, transform_indices = @transform_5, window_bounds = array<i64: 1, 32>}, {transform_indices = @transform_6, window_bounds = array<i64: 1, 16, 32>}]} {
    %c0_i32 = arith.constant 0 : i32
    %0 = arith.cmpi eq, %arg2, %c0_i32 : i32
    %1 = arith.extui %0 : i1 to i32
    %c0_i32_0 = arith.constant 0 : i32
    %2 = arith.cmpi ne, %1, %c0_i32_0 : i32
    scf.if %2 {
      %cst_42 = arith.constant 0.000000e+00 : f32
      %38 = vector.broadcast %cst_42 : f32 to vector<16x32xf32>
      %c0_43 = arith.constant 0 : index
      %c0_44 = arith.constant 0 : index
      %39 = vector.load %arg10[%c0_43, %c0_44] : memref<16x32xf32, #tpu.memory_space<vmem>>, vector<16x32xf32>
      tpu.vector_store %arg10[%c0_43, %c0_44], %38 {strides = array<i32>} : memref<16x32xf32, #tpu.memory_space<vmem>>, vector<16x32xf32>,
    } else {
    }
    %c0 = arith.constant 0 : index
    %c0_1 = arith.constant 0 : index
    %3 = vector.load %arg10[%c0, %c0_1] : memref<16x32xf32, #tpu.memory_space<vmem>>, vector<16x32xf32>
    %c0_2 = arith.constant 0 : index
    %c0_3 = arith.constant 0 : index
    %c0_4 = arith.constant 0 : index
    %4 = vector.load %arg4[%c0_2, %c0_3, %c0_4] : memref<4x16x8xbf16, #tpu.memory_space<vmem>>, vector<1x16x8xbf16>
    %5 = vector.shape_cast %4 : vector<1x16x8xbf16> to vector<16x8xbf16>
    %c0_5 = arith.constant 0 : index
    %c0_6 = arith.constant 0 : index
    %c0_7 = arith.constant 0 : index
    %6 = vector.load %arg5[%c0_5, %c0_6, %c0_7] : memref<4x8x32xbf16, #tpu.memory_space<vmem>>, vector<1x8x32xbf16>
    %7 = vector.shape_cast %6 : vector<1x8x32xbf16> to vector<8x32xbf16>
    %cst = arith.constant dense<0.000000e+00> : vector<16x32xf32>
    %8 = tpu.matmul %5, %7, %cst {dimension_numbers = #tpu.dot_dimension_numbers<[1], [0], [0], [1], [0, 0, 1, 1], [], []>} : vector<16x8xbf16>, vector<8x32xbf16>, vector<16x32xf32> -> vector<16x32xf32>
    %9 = arith.addf %3, %8 : vector<16x32xf32>
    %c0_8 = arith.constant 0 : index
    %c0_9 = arith.constant 0 : index
    %10 = vector.load %arg10[%c0_8, %c0_9] : memref<16x32xf32, #tpu.memory_space<vmem>>, vector<16x32xf32>
    tpu.vector_store %arg10[%c0_8, %c0_9], %9 {strides = array<i32>} : memref<16x32xf32, #tpu.memory_space<vmem>>, vector<16x32xf32>,
    %c0_10 = arith.constant 0 : index
    %c0_11 = arith.constant 0 : index
    %11 = vector.load %arg10[%c0_10, %c0_11] : memref<16x32xf32, #tpu.memory_space<vmem>>, vector<16x32xf32>
    %c1 = arith.constant 1 : index
    %c0_12 = arith.constant 0 : index
    %c0_13 = arith.constant 0 : index
    %12 = vector.load %arg4[%c1, %c0_12, %c0_13] : memref<4x16x8xbf16, #tpu.memory_space<vmem>>, vector<1x16x8xbf16>
    %13 = vector.shape_cast %12 : vector<1x16x8xbf16> to vector<16x8xbf16>
    %c1_14 = arith.constant 1 : index
    %c0_15 = arith.constant 0 : index
    %c0_16 = arith.constant 0 : index
    %14 = vector.load %arg5[%c1_14, %c0_15, %c0_16] : memref<4x8x32xbf16, #tpu.memory_space<vmem>>, vector<1x8x32xbf16>
    %15 = vector.shape_cast %14 : vector<1x8x32xbf16> to vector<8x32xbf16>
    %cst_17 = arith.constant dense<0.000000e+00> : vector<16x32xf32>
    %16 = tpu.matmul %13, %15, %cst_17 {dimension_numbers = #tpu.dot_dimension_numbers<[1], [0], [0], [1], [0, 0, 1, 1], [], []>} : vector<16x8xbf16>, vector<8x32xbf16>, vector<16x32xf32> -> vector<16x32xf32>
    %17 = arith.addf %11, %16 : vector<16x32xf32>
    %c0_18 = arith.constant 0 : index
    %c0_19 = arith.constant 0 : index
    %18 = vector.load %arg10[%c0_18, %c0_19] : memref<16x32xf32, #tpu.memory_space<vmem>>, vector<16x32xf32>
    tpu.vector_store %arg10[%c0_18, %c0_19], %17 {strides = array<i32>} : memref<16x32xf32, #tpu.memory_space<vmem>>, vector<16x32xf32>,
    %c0_20 = arith.constant 0 : index
    %c0_21 = arith.constant 0 : index
    %19 = vector.load %arg10[%c0_20, %c0_21] : memref<16x32xf32, #tpu.memory_space<vmem>>, vector<16x32xf32>
    %c2 = arith.constant 2 : index
    %c0_22 = arith.constant 0 : index
    %c0_23 = arith.constant 0 : index
    %20 = vector.load %arg4[%c2, %c0_22, %c0_23] : memref<4x16x8xbf16, #tpu.memory_space<vmem>>, vector<1x16x8xbf16>
    %21 = vector.shape_cast %20 : vector<1x16x8xbf16> to vector<16x8xbf16>
    %c2_24 = arith.constant 2 : index
    %c0_25 = arith.constant 0 : index
    %c0_26 = arith.constant 0 : index
    %22 = vector.load %arg5[%c2_24, %c0_25, %c0_26] : memref<4x8x32xbf16, #tpu.memory_space<vmem>>, vector<1x8x32xbf16>
    %23 = vector.shape_cast %22 : vector<1x8x32xbf16> to vector<8x32xbf16>
    %cst_27 = arith.constant dense<0.000000e+00> : vector<16x32xf32>
    %24 = tpu.matmul %21, %23, %cst_27 {dimension_numbers = #tpu.dot_dimension_numbers<[1], [0], [0], [1], [0, 0, 1, 1], [], []>} : vector<16x8xbf16>, vector<8x32xbf16>, vector<16x32xf32> -> vector<16x32xf32>
    %25 = arith.addf %19, %24 : vector<16x32xf32>
    %c0_28 = arith.constant 0 : index
    %c0_29 = arith.constant 0 : index
    %26 = vector.load %arg10[%c0_28, %c0_29] : memref<16x32xf32, #tpu.memory_space<vmem>>, vector<16x32xf32>
    tpu.vector_store %arg10[%c0_28, %c0_29], %25 {strides = array<i32>} : memref<16x32xf32, #tpu.memory_space<vmem>>, vector<16x32xf32>,
    %c0_30 = arith.constant 0 : index
    %c0_31 = arith.constant 0 : index
    %27 = vector.load %arg10[%c0_30, %c0_31] : memref<16x32xf32, #tpu.memory_space<vmem>>, vector<16x32xf32>
    %c3 = arith.constant 3 : index
    %c0_32 = arith.constant 0 : index
    %c0_33 = arith.constant 0 : index
    %28 = vector.load %arg4[%c3, %c0_32, %c0_33] : memref<4x16x8xbf16, #tpu.memory_space<vmem>>, vector<1x16x8xbf16>
    %29 = vector.shape_cast %28 : vector<1x16x8xbf16> to vector<16x8xbf16>
    %c3_34 = arith.constant 3 : index
    %c0_35 = arith.constant 0 : index
    %c0_36 = arith.constant 0 : index
    %30 = vector.load %arg5[%c3_34, %c0_35, %c0_36] : memref<4x8x32xbf16, #tpu.memory_space<vmem>>, vector<1x8x32xbf16>
    %31 = vector.shape_cast %30 : vector<1x8x32xbf16> to vector<8x32xbf16>
    %cst_37 = arith.constant dense<0.000000e+00> : vector<16x32xf32>
    %32 = tpu.matmul %29, %31, %cst_37 {dimension_numbers = #tpu.dot_dimension_numbers<[1], [0], [0], [1], [0, 0, 1, 1], [], []>} : vector<16x8xbf16>, vector<8x32xbf16>, vector<16x32xf32> -> vector<16x32xf32>
    %33 = arith.addf %27, %32 : vector<16x32xf32>
    %c0_38 = arith.constant 0 : index
    %c0_39 = arith.constant 0 : index
    %34 = vector.load %arg10[%c0_38, %c0_39] : memref<16x32xf32, #tpu.memory_space<vmem>>, vector<16x32xf32>
    tpu.vector_store %arg10[%c0_38, %c0_39], %33 {strides = array<i32>} : memref<16x32xf32, #tpu.memory_space<vmem>>, vector<16x32xf32>,
    %c0_i32_40 = arith.constant 0 : i32
    %35 = arith.cmpi eq, %arg2, %c0_i32_40 : i32
    %36 = arith.extui %35 : i1 to i32
    %c0_i32_41 = arith.constant 0 : i32
    %37 = arith.cmpi ne, %36, %c0_i32_41 : i32
    scf.if %37 {
      %c0_42 = arith.constant 0 : index
      %c0_43 = arith.constant 0 : index
      %c0_44 = arith.constant 0 : index
      %38 = vector.load %arg3[%c0_42, %c0_43, %c0_44] : memref<1x16x32xbf16, #tpu.memory_space<vmem>>, vector<1x16x32xbf16>
      %39 = vector.shape_cast %38 : vector<1x16x32xbf16> to vector<16x32xbf16>
      %40 = arith.extf %39 : vector<16x32xbf16> to vector<16x32xf32>
      %c0_45 = arith.constant 0 : index
      %c0_46 = arith.constant 0 : index
      %41 = vector.load %arg10[%c0_45, %c0_46] : memref<16x32xf32, #tpu.memory_space<vmem>>, vector<16x32xf32>
      %42 = arith.addf %40, %41 : vector<16x32xf32>
      %c0_47 = arith.constant 0 : index
      %c0_48 = arith.constant 0 : index
      %43 = vector.load %arg6[%c0_47, %c0_48] : memref<1x32xf32, #tpu.memory_space<vmem>>, vector<1x32xf32>
      %44 = vector.broadcast %43 : vector<1x32xf32> to vector<16x32xf32>
      %45 = arith.addf %42, %44 : vector<16x32xf32>
      %c0_49 = arith.constant 0 : index
      %c0_50 = arith.constant 0 : index
      %46 = vector.load %arg7[%c0_49, %c0_50] : memref<1x32xf32, #tpu.memory_space<vmem>>, vector<1x32xf32>
      %c0_51 = arith.constant 0 : index
      %c0_52 = arith.constant 0 : index
      %47 = vector.load %arg8[%c0_51, %c0_52] : memref<1x32xf32, #tpu.memory_space<vmem>>, vector<1x32xf32>
      %cst_53 = arith.constant dense<0.000000e+00> : vector<16xf32>
      %48 = vector.multi_reduction <add>, %45, %cst_53 [1] : vector<16x32xf32> to vector<16xf32>
      %49 = vector.shape_cast %48 : vector<16xf32> to vector<16x1xf32>
      %cst_54 = arith.constant 3.200000e+01 : f32
      %50 = vector.broadcast %cst_54 : f32 to vector<16x1xf32>
      %51 = arith.divf %49, %50 : vector<16x1xf32>
      %52 = vector.broadcast %51 : vector<16x1xf32> to vector<16x32xf32>
      %53 = arith.subf %45, %52 : vector<16x32xf32>
      %54 = vector.broadcast %51 : vector<16x1xf32> to vector<16x32xf32>
      %55 = arith.subf %45, %54 : vector<16x32xf32>
      %56 = arith.mulf %53, %55 : vector<16x32xf32>
      %cst_55 = arith.constant dense<0.000000e+00> : vector<16xf32>
      %57 = vector.multi_reduction <add>, %56, %cst_55 [1] : vector<16x32xf32> to vector<16xf32>
      %58 = vector.shape_cast %57 : vector<16xf32> to vector<16x1xf32>
      %cst_56 = arith.constant 3.200000e+01 : f32
      %59 = vector.broadcast %cst_56 : f32 to vector<16x1xf32>
      %60 = arith.divf %58, %59 : vector<16x1xf32>
      %cst_57 = arith.constant 9.99999974E-6 : f32
      %61 = vector.broadcast %cst_57 : f32 to vector<16x1xf32>
      %62 = arith.addf %60, %61 : vector<16x1xf32>
      %63 = math.rsqrt %62 : vector<16x1xf32>
      %64 = vector.broadcast %51 : vector<16x1xf32> to vector<16x32xf32>
      %65 = arith.subf %45, %64 : vector<16x32xf32>
      %66 = vector.broadcast %63 : vector<16x1xf32> to vector<16x32xf32>
      %67 = arith.mulf %65, %66 : vector<16x32xf32>
      %68 = vector.broadcast %46 : vector<1x32xf32> to vector<16x32xf32>
      %69 = arith.mulf %67, %68 : vector<16x32xf32>
      %70 = vector.broadcast %47 : vector<1x32xf32> to vector<16x32xf32>
      %71 = arith.addf %69, %70 : vector<16x32xf32>
      %72 = arith.truncf %71 : vector<16x32xf32> to vector<16x32xbf16>
      %c0_58 = arith.constant 0 : index
      %c0_59 = arith.constant 0 : index
      %c0_60 = arith.constant 0 : index
      %73 = vector.load %arg9[%c0_58, %c0_59, %c0_60] : memref<1x16x32xbf16, #tpu.memory_space<vmem>>, vector<1x16x32xbf16>
      %74 = vector.shape_cast %73 : vector<1x16x32xbf16> to vector<16x32xbf16>
      %75 = vector.shape_cast %72 : vector<16x32xbf16> to vector<1x16x32xbf16>
      tpu.vector_store %arg9[%c0_58, %c0_59, %c0_60], %75 {strides = array<i32>} : memref<1x16x32xbf16, #tpu.memory_space<vmem>>, vector<1x16x32xbf16>,
    } else {
    }
    return
  }
  func.func @transform_0(%arg0: i32, %arg1: i32, %arg2: i32) -> (i32, i32, i32) {
    %c0_i32 = arith.constant 0 : i32
    %c0_i32_0 = arith.constant 0 : i32
    return %arg0, %arg1, %c0_i32 : i32, i32, i32
  }
  func.func @transform_1(%arg0: i32, %arg1: i32, %arg2: i32) -> (i32, i32, i32) {
    %c1_i32 = arith.constant 1 : i32
    %0 = arith.muli %arg0, %c1_i32 : i32
    %1 = arith.addi %0, %arg2 : i32
    %c0_i32 = arith.constant 0 : i32
    %c0_i32_0 = arith.constant 0 : i32
    return %1, %arg1, %c0_i32 : i32, i32, i32
  }
  func.func @transform_2(%arg0: i32, %arg1: i32, %arg2: i32) -> (i32, i32, i32) {
    %c0_i32 = arith.constant 0 : i32
    %c0_i32_0 = arith.constant 0 : i32
    %c0_i32_1 = arith.constant 0 : i32
    return %arg2, %c0_i32, %c0_i32_0 : i32, i32, i32
  }
  func.func @transform_3(%arg0: i32, %arg1: i32, %arg2: i32) -> (i32, i32) {
    %c0_i32 = arith.constant 0 : i32
    %c0_i32_0 = arith.constant 0 : i32
    %c0_i32_1 = arith.constant 0 : i32
    return %c0_i32, %c0_i32_0 : i32, i32
  }
  func.func @transform_4(%arg0: i32, %arg1: i32, %arg2: i32) -> (i32, i32) {
    %c0_i32 = arith.constant 0 : i32
    %c0_i32_0 = arith.constant 0 : i32
    %c0_i32_1 = arith.constant 0 : i32
    return %c0_i32, %c0_i32_0 : i32, i32
  }
  func.func @transform_5(%arg0: i32, %arg1: i32, %arg2: i32) -> (i32, i32) {
    %c0_i32 = arith.constant 0 : i32
    %c0_i32_0 = arith.constant 0 : i32
    %c0_i32_1 = arith.constant 0 : i32
    return %c0_i32, %c0_i32_0 : i32, i32
  }
  func.func @transform_6(%arg0: i32, %arg1: i32, %arg2: i32) -> (i32, i32, i32) {
    %c0_i32 = arith.constant 0 : i32
    %c0_i32_0 = arith.constant 0 : i32
    return %arg0, %arg1, %c0_i32 : i32, i32, i32
  }
}

module attributes {stable_mosaic.version = 11 : i64} {
  func.func @flash_attn_kernel(%arg0: i32, %arg1: i32, %arg2: i32, %arg3: memref<1x1x16x8xbf16, #tpu.memory_space<vmem>>, %arg4: memref<1x1x16x8xbf16, #tpu.memory_space<vmem>>, %arg5: memref<1x1x16x8xbf16, #tpu.memory_space<vmem>>, %arg6: memref<1x16x8xbf16, #tpu.memory_space<vmem>>, %arg7: memref<16x1xf32, #tpu.memory_space<vmem>>, %arg8: memref<16x1xf32, #tpu.memory_space<vmem>>, %arg9: memref<16x8xf32, #tpu.memory_space<vmem>>) attributes {dimension_semantics = [#tpu.dimension_semantics<parallel>, #tpu.dimension_semantics<parallel>, #tpu.dimension_semantics<arbitrary>], iteration_bounds = array<i64: 8, 1, 1>, scalar_prefetch = 0 : i64, scratch_operands = 3 : i64, tpu.core_type = #tpu.core_type<tc>, window_params = [{transform_indices = @transform_0, window_bounds = array<i64: 1, 1, 16, 8>}, {transform_indices = @transform_1, window_bounds = array<i64: 1, 1, 16, 8>}, {transform_indices = @transform_2, window_bounds = array<i64: 1, 1, 16, 8>}, {transform_indices = @transform_3, window_bounds = array<i64: 1, 16, 8>}]} {
    %c0_i32 = arith.constant 0 : i32
    %0 = arith.cmpi eq, %arg2, %c0_i32 : i32
    %1 = arith.extui %0 : i1 to i32
    %c0_i32_0 = arith.constant 0 : i32
    %2 = arith.cmpi ne, %1, %c0_i32_0 : i32
    scf.if %2 {
      %cst_29 = arith.constant 0xFF800000 : f32
      %36 = vector.broadcast %cst_29 : f32 to vector<16x1xf32>
      %c0_30 = arith.constant 0 : index
      %c0_31 = arith.constant 0 : index
      %37 = vector.load %arg7[%c0_30, %c0_31] : memref<16x1xf32, #tpu.memory_space<vmem>>, vector<16x1xf32>
      tpu.vector_store %arg7[%c0_30, %c0_31], %36 {strides = array<i32>} : memref<16x1xf32, #tpu.memory_space<vmem>>, vector<16x1xf32>,
      %cst_32 = arith.constant 0.000000e+00 : f32
      %38 = vector.broadcast %cst_32 : f32 to vector<16x1xf32>
      %c0_33 = arith.constant 0 : index
      %c0_34 = arith.constant 0 : index
      %39 = vector.load %arg8[%c0_33, %c0_34] : memref<16x1xf32, #tpu.memory_space<vmem>>, vector<16x1xf32>
      tpu.vector_store %arg8[%c0_33, %c0_34], %38 {strides = array<i32>} : memref<16x1xf32, #tpu.memory_space<vmem>>, vector<16x1xf32>,
      %cst_35 = arith.constant 0.000000e+00 : f32
      %40 = vector.broadcast %cst_35 : f32 to vector<16x8xf32>
      %c0_36 = arith.constant 0 : index
      %c0_37 = arith.constant 0 : index
      %41 = vector.load %arg9[%c0_36, %c0_37] : memref<16x8xf32, #tpu.memory_space<vmem>>, vector<16x8xf32>
      tpu.vector_store %arg9[%c0_36, %c0_37], %40 {strides = array<i32>} : memref<16x8xf32, #tpu.memory_space<vmem>>, vector<16x8xf32>,
    } else {
    }
    %c0 = arith.constant 0 : index
    %c0_1 = arith.constant 0 : index
    %c0_2 = arith.constant 0 : index
    %c0_3 = arith.constant 0 : index
    %3 = vector.load %arg3[%c0, %c0_1, %c0_2, %c0_3] : memref<1x1x16x8xbf16, #tpu.memory_space<vmem>>, vector<1x1x16x8xbf16>
    %4 = vector.shape_cast %3 : vector<1x1x16x8xbf16> to vector<16x8xbf16>
    %c0_4 = arith.constant 0 : index
    %c0_5 = arith.constant 0 : index
    %c0_6 = arith.constant 0 : index
    %c0_7 = arith.constant 0 : index
    %5 = vector.load %arg4[%c0_4, %c0_5, %c0_6, %c0_7] : memref<1x1x16x8xbf16, #tpu.memory_space<vmem>>, vector<1x1x16x8xbf16>
    %6 = vector.shape_cast %5 : vector<1x1x16x8xbf16> to vector<16x8xbf16>
    %cst = arith.constant dense<0.000000e+00> : vector<16x16xf32>
    %7 = tpu.matmul %4, %6, %cst {dimension_numbers = #tpu.dot_dimension_numbers<[1], [1], [0], [0], [0, 0, 1, 0], [], []>} : vector<16x8xbf16>, vector<16x8xbf16>, vector<16x16xf32> -> vector<16x16xf32>
    %c0_8 = arith.constant 0 : index
    %c0_9 = arith.constant 0 : index
    %8 = vector.load %arg7[%c0_8, %c0_9] : memref<16x1xf32, #tpu.memory_space<vmem>>, vector<16x1xf32>
    %cst_10 = arith.constant dense<0xFF800000> : vector<16xf32>
    %9 = vector.multi_reduction <maximumf>, %7, %cst_10 [1] : vector<16x16xf32> to vector<16xf32>
    %10 = vector.shape_cast %9 : vector<16xf32> to vector<16x1xf32>
    %11 = arith.maximumf %8, %10 : vector<16x1xf32>
    %12 = arith.subf %8, %11 : vector<16x1xf32>
    %13 = math.exp %12 : vector<16x1xf32>
    %14 = vector.broadcast %11 : vector<16x1xf32> to vector<16x16xf32>
    %15 = arith.subf %7, %14 : vector<16x16xf32>
    %16 = math.exp %15 : vector<16x16xf32>
    %c0_11 = arith.constant 0 : index
    %c0_12 = arith.constant 0 : index
    %17 = vector.load %arg8[%c0_11, %c0_12] : memref<16x1xf32, #tpu.memory_space<vmem>>, vector<16x1xf32>
    %18 = arith.mulf %13, %17 : vector<16x1xf32>
    %cst_13 = arith.constant dense<0.000000e+00> : vector<16xf32>
    %19 = vector.multi_reduction <add>, %16, %cst_13 [1] : vector<16x16xf32> to vector<16xf32>
    %20 = vector.shape_cast %19 : vector<16xf32> to vector<16x1xf32>
    %21 = arith.addf %18, %20 : vector<16x1xf32>
    %c0_14 = arith.constant 0 : index
    %c0_15 = arith.constant 0 : index
    %22 = vector.load %arg8[%c0_14, %c0_15] : memref<16x1xf32, #tpu.memory_space<vmem>>, vector<16x1xf32>
    tpu.vector_store %arg8[%c0_14, %c0_15], %21 {strides = array<i32>} : memref<16x1xf32, #tpu.memory_space<vmem>>, vector<16x1xf32>,
    %c0_16 = arith.constant 0 : index
    %c0_17 = arith.constant 0 : index
    %23 = vector.load %arg9[%c0_16, %c0_17] : memref<16x8xf32, #tpu.memory_space<vmem>>, vector<16x8xf32>
    %24 = vector.broadcast %13 : vector<16x1xf32> to vector<16x8xf32>
    %25 = arith.mulf %24, %23 : vector<16x8xf32>
    %26 = arith.truncf %16 : vector<16x16xf32> to vector<16x16xbf16>
    %c0_18 = arith.constant 0 : index
    %c0_19 = arith.constant 0 : index
    %c0_20 = arith.constant 0 : index
    %c0_21 = arith.constant 0 : index
    %27 = vector.load %arg5[%c0_18, %c0_19, %c0_20, %c0_21] : memref<1x1x16x8xbf16, #tpu.memory_space<vmem>>, vector<1x1x16x8xbf16>
    %28 = vector.shape_cast %27 : vector<1x1x16x8xbf16> to vector<16x8xbf16>
    %cst_22 = arith.constant dense<0.000000e+00> : vector<16x8xf32>
    %29 = tpu.matmul %26, %28, %cst_22 {dimension_numbers = #tpu.dot_dimension_numbers<[1], [0], [0], [1], [0, 0, 1, 1], [], []>} : vector<16x16xbf16>, vector<16x8xbf16>, vector<16x8xf32> -> vector<16x8xf32>
    %30 = arith.addf %25, %29 : vector<16x8xf32>
    %c0_23 = arith.constant 0 : index
    %c0_24 = arith.constant 0 : index
    %31 = vector.load %arg9[%c0_23, %c0_24] : memref<16x8xf32, #tpu.memory_space<vmem>>, vector<16x8xf32>
    tpu.vector_store %arg9[%c0_23, %c0_24], %30 {strides = array<i32>} : memref<16x8xf32, #tpu.memory_space<vmem>>, vector<16x8xf32>,
    %c0_25 = arith.constant 0 : index
    %c0_26 = arith.constant 0 : index
    %32 = vector.load %arg7[%c0_25, %c0_26] : memref<16x1xf32, #tpu.memory_space<vmem>>, vector<16x1xf32>
    tpu.vector_store %arg7[%c0_25, %c0_26], %11 {strides = array<i32>} : memref<16x1xf32, #tpu.memory_space<vmem>>, vector<16x1xf32>,
    %c0_i32_27 = arith.constant 0 : i32
    %33 = arith.cmpi eq, %arg2, %c0_i32_27 : i32
    %34 = arith.extui %33 : i1 to i32
    %c0_i32_28 = arith.constant 0 : i32
    %35 = arith.cmpi ne, %34, %c0_i32_28 : i32
    scf.if %35 {
      %c0_29 = arith.constant 0 : index
      %c0_30 = arith.constant 0 : index
      %36 = vector.load %arg9[%c0_29, %c0_30] : memref<16x8xf32, #tpu.memory_space<vmem>>, vector<16x8xf32>
      %c0_31 = arith.constant 0 : index
      %c0_32 = arith.constant 0 : index
      %37 = vector.load %arg8[%c0_31, %c0_32] : memref<16x1xf32, #tpu.memory_space<vmem>>, vector<16x1xf32>
      %38 = tpu.reciprocal %37 {approx = true} : vector<16x1xf32> -> vector<16x1xf32>
      %39 = vector.broadcast %38 : vector<16x1xf32> to vector<16x8xf32>
      %40 = arith.mulf %36, %39 : vector<16x8xf32>
      %41 = arith.truncf %40 : vector<16x8xf32> to vector<16x8xbf16>
      %c0_33 = arith.constant 0 : index
      %c0_34 = arith.constant 0 : index
      %c0_35 = arith.constant 0 : index
      %42 = vector.load %arg6[%c0_33, %c0_34, %c0_35] : memref<1x16x8xbf16, #tpu.memory_space<vmem>>, vector<1x16x8xbf16>
      %43 = vector.shape_cast %42 : vector<1x16x8xbf16> to vector<16x8xbf16>
      %44 = vector.shape_cast %41 : vector<16x8xbf16> to vector<1x16x8xbf16>
      tpu.vector_store %arg6[%c0_33, %c0_34, %c0_35], %44 {strides = array<i32>} : memref<1x16x8xbf16, #tpu.memory_space<vmem>>, vector<1x16x8xbf16>,
    } else {
    }
    return
  }
  func.func @transform_0(%arg0: i32, %arg1: i32, %arg2: i32) -> (i32, i32, i32, i32) {
    %c0_i32 = arith.constant 0 : i32
    %c0_i32_0 = arith.constant 0 : i32
    %c0_i32_1 = arith.constant 0 : i32
    return %c0_i32, %arg0, %arg1, %c0_i32_0 : i32, i32, i32, i32
  }
  func.func @transform_1(%arg0: i32, %arg1: i32, %arg2: i32) -> (i32, i32, i32, i32) {
    %c1_i32 = arith.constant 1 : i32
    %c0_i32 = arith.constant 0 : i32
    %c0_i32_0 = arith.constant 0 : i32
    return %c1_i32, %arg0, %arg2, %c0_i32 : i32, i32, i32, i32
  }
  func.func @transform_2(%arg0: i32, %arg1: i32, %arg2: i32) -> (i32, i32, i32, i32) {
    %c2_i32 = arith.constant 2 : i32
    %c0_i32 = arith.constant 0 : i32
    %c0_i32_0 = arith.constant 0 : i32
    return %c2_i32, %arg0, %arg2, %c0_i32 : i32, i32, i32, i32
  }
  func.func @transform_3(%arg0: i32, %arg1: i32, %arg2: i32) -> (i32, i32, i32) {
    %c0_i32 = arith.constant 0 : i32
    %c0_i32_0 = arith.constant 0 : i32
    return %arg0, %arg1, %c0_i32 : i32, i32, i32
  }
}

module attributes {stable_mosaic.version = 11 : i64} {
  func.func @ffn_kernel(%arg0: i32, %arg1: i32, %arg2: i32, %arg3: memref<1x16x32xbf16, #tpu.memory_space<vmem>>, %arg4: memref<32x64xbf16, #tpu.memory_space<vmem>>, %arg5: memref<1x64xf32, #tpu.memory_space<vmem>>, %arg6: memref<64x32xbf16, #tpu.memory_space<vmem>>, %arg7: memref<1x32xf32, #tpu.memory_space<vmem>>, %arg8: memref<1x32xf32, #tpu.memory_space<vmem>>, %arg9: memref<1x32xf32, #tpu.memory_space<vmem>>, %arg10: memref<1x16x32xbf16, #tpu.memory_space<vmem>>, %arg11: memref<16x32xf32, #tpu.memory_space<vmem>>) attributes {dimension_semantics = [#tpu.dimension_semantics<parallel>, #tpu.dimension_semantics<parallel>, #tpu.dimension_semantics<arbitrary>], iteration_bounds = array<i64: 2, 1, 1>, scalar_prefetch = 0 : i64, scratch_operands = 1 : i64, tpu.core_type = #tpu.core_type<tc>, window_params = [{transform_indices = @transform_0, window_bounds = array<i64: 1, 16, 32>}, {transform_indices = @transform_1, window_bounds = array<i64: 32, 64>}, {transform_indices = @transform_2, window_bounds = array<i64: 1, 64>}, {transform_indices = @transform_3, window_bounds = array<i64: 64, 32>}, {pipeline_mode = #tpu.pipeline_mode<synchronous>, transform_indices = @transform_4, window_bounds = array<i64: 1, 32>}, {pipeline_mode = #tpu.pipeline_mode<synchronous>, transform_indices = @transform_5, window_bounds = array<i64: 1, 32>}, {pipeline_mode = #tpu.pipeline_mode<synchronous>, transform_indices = @transform_6, window_bounds = array<i64: 1, 32>}, {transform_indices = @transform_7, window_bounds = array<i64: 1, 16, 32>}]} {
    %c0_i32 = arith.constant 0 : i32
    %0 = arith.cmpi eq, %arg2, %c0_i32 : i32
    %1 = arith.extui %0 : i1 to i32
    %c0_i32_0 = arith.constant 0 : i32
    %2 = arith.cmpi ne, %1, %c0_i32_0 : i32
    scf.if %2 {
      %cst_17 = arith.constant 0.000000e+00 : f32
      %21 = vector.broadcast %cst_17 : f32 to vector<16x32xf32>
      %c0_18 = arith.constant 0 : index
      %c0_19 = arith.constant 0 : index
      %22 = vector.load %arg11[%c0_18, %c0_19] : memref<16x32xf32, #tpu.memory_space<vmem>>, vector<16x32xf32>
      tpu.vector_store %arg11[%c0_18, %c0_19], %21 {strides = array<i32>} : memref<16x32xf32, #tpu.memory_space<vmem>>, vector<16x32xf32>,
    } else {
    }
    %c0 = arith.constant 0 : index
    %c0_1 = arith.constant 0 : index
    %c0_2 = arith.constant 0 : index
    %3 = vector.load %arg3[%c0, %c0_1, %c0_2] : memref<1x16x32xbf16, #tpu.memory_space<vmem>>, vector<1x16x32xbf16>
    %4 = vector.shape_cast %3 : vector<1x16x32xbf16> to vector<16x32xbf16>
    %c0_3 = arith.constant 0 : index
    %c0_4 = arith.constant 0 : index
    %5 = vector.load %arg4[%c0_3, %c0_4] : memref<32x64xbf16, #tpu.memory_space<vmem>>, vector<32x64xbf16>
    %cst = arith.constant dense<0.000000e+00> : vector<16x64xf32>
    %6 = tpu.matmul %4, %5, %cst {dimension_numbers = #tpu.dot_dimension_numbers<[1], [0], [0], [1], [0, 0, 1, 1], [], []>} : vector<16x32xbf16>, vector<32x64xbf16>, vector<16x64xf32> -> vector<16x64xf32>
    %c0_5 = arith.constant 0 : index
    %c0_6 = arith.constant 0 : index
    %7 = vector.load %arg5[%c0_5, %c0_6] : memref<1x64xf32, #tpu.memory_space<vmem>>, vector<1x64xf32>
    %8 = vector.broadcast %7 : vector<1x64xf32> to vector<16x64xf32>
    %9 = arith.addf %6, %8 : vector<16x64xf32>
    %cst_7 = arith.constant 0.000000e+00 : f32
    %10 = vector.broadcast %cst_7 : f32 to vector<16x64xf32>
    %11 = arith.maximumf %9, %10 : vector<16x64xf32>
    %12 = arith.truncf %11 : vector<16x64xf32> to vector<16x64xbf16>
    %c0_8 = arith.constant 0 : index
    %c0_9 = arith.constant 0 : index
    %13 = vector.load %arg11[%c0_8, %c0_9] : memref<16x32xf32, #tpu.memory_space<vmem>>, vector<16x32xf32>
    %c0_10 = arith.constant 0 : index
    %c0_11 = arith.constant 0 : index
    %14 = vector.load %arg6[%c0_10, %c0_11] : memref<64x32xbf16, #tpu.memory_space<vmem>>, vector<64x32xbf16>
    %cst_12 = arith.constant dense<0.000000e+00> : vector<16x32xf32>
    %15 = tpu.matmul %12, %14, %cst_12 {dimension_numbers = #tpu.dot_dimension_numbers<[1], [0], [0], [1], [0, 0, 1, 1], [], []>} : vector<16x64xbf16>, vector<64x32xbf16>, vector<16x32xf32> -> vector<16x32xf32>
    %16 = arith.addf %13, %15 : vector<16x32xf32>
    %c0_13 = arith.constant 0 : index
    %c0_14 = arith.constant 0 : index
    %17 = vector.load %arg11[%c0_13, %c0_14] : memref<16x32xf32, #tpu.memory_space<vmem>>, vector<16x32xf32>
    tpu.vector_store %arg11[%c0_13, %c0_14], %16 {strides = array<i32>} : memref<16x32xf32, #tpu.memory_space<vmem>>, vector<16x32xf32>,
    %c0_i32_15 = arith.constant 0 : i32
    %18 = arith.cmpi eq, %arg2, %c0_i32_15 : i32
    %19 = arith.extui %18 : i1 to i32
    %c0_i32_16 = arith.constant 0 : i32
    %20 = arith.cmpi ne, %19, %c0_i32_16 : i32
    scf.if %20 {
      %c0_17 = arith.constant 0 : index
      %c0_18 = arith.constant 0 : index
      %c0_19 = arith.constant 0 : index
      %21 = vector.load %arg3[%c0_17, %c0_18, %c0_19] : memref<1x16x32xbf16, #tpu.memory_space<vmem>>, vector<1x16x32xbf16>
      %22 = vector.shape_cast %21 : vector<1x16x32xbf16> to vector<16x32xbf16>
      %23 = arith.extf %22 : vector<16x32xbf16> to vector<16x32xf32>
      %c0_20 = arith.constant 0 : index
      %c0_21 = arith.constant 0 : index
      %24 = vector.load %arg11[%c0_20, %c0_21] : memref<16x32xf32, #tpu.memory_space<vmem>>, vector<16x32xf32>
      %25 = arith.addf %23, %24 : vector<16x32xf32>
      %c0_22 = arith.constant 0 : index
      %c0_23 = arith.constant 0 : index
      %26 = vector.load %arg7[%c0_22, %c0_23] : memref<1x32xf32, #tpu.memory_space<vmem>>, vector<1x32xf32>
      %27 = vector.broadcast %26 : vector<1x32xf32> to vector<16x32xf32>
      %28 = arith.addf %25, %27 : vector<16x32xf32>
      %c0_24 = arith.constant 0 : index
      %c0_25 = arith.constant 0 : index
      %29 = vector.load %arg8[%c0_24, %c0_25] : memref<1x32xf32, #tpu.memory_space<vmem>>, vector<1x32xf32>
      %c0_26 = arith.constant 0 : index
      %c0_27 = arith.constant 0 : index
      %30 = vector.load %arg9[%c0_26, %c0_27] : memref<1x32xf32, #tpu.memory_space<vmem>>, vector<1x32xf32>
      %cst_28 = arith.constant dense<0.000000e+00> : vector<16xf32>
      %31 = vector.multi_reduction <add>, %28, %cst_28 [1] : vector<16x32xf32> to vector<16xf32>
      %32 = vector.shape_cast %31 : vector<16xf32> to vector<16x1xf32>
      %cst_29 = arith.constant 3.200000e+01 : f32
      %33 = vector.broadcast %cst_29 : f32 to vector<16x1xf32>
      %34 = arith.divf %32, %33 : vector<16x1xf32>
      %35 = vector.broadcast %34 : vector<16x1xf32> to vector<16x32xf32>
      %36 = arith.subf %28, %35 : vector<16x32xf32>
      %37 = vector.broadcast %34 : vector<16x1xf32> to vector<16x32xf32>
      %38 = arith.subf %28, %37 : vector<16x32xf32>
      %39 = arith.mulf %36, %38 : vector<16x32xf32>
      %cst_30 = arith.constant dense<0.000000e+00> : vector<16xf32>
      %40 = vector.multi_reduction <add>, %39, %cst_30 [1] : vector<16x32xf32> to vector<16xf32>
      %41 = vector.shape_cast %40 : vector<16xf32> to vector<16x1xf32>
      %cst_31 = arith.constant 3.200000e+01 : f32
      %42 = vector.broadcast %cst_31 : f32 to vector<16x1xf32>
      %43 = arith.divf %41, %42 : vector<16x1xf32>
      %cst_32 = arith.constant 9.99999974E-6 : f32
      %44 = vector.broadcast %cst_32 : f32 to vector<16x1xf32>
      %45 = arith.addf %43, %44 : vector<16x1xf32>
      %46 = math.rsqrt %45 : vector<16x1xf32>
      %47 = vector.broadcast %34 : vector<16x1xf32> to vector<16x32xf32>
      %48 = arith.subf %28, %47 : vector<16x32xf32>
      %49 = vector.broadcast %46 : vector<16x1xf32> to vector<16x32xf32>
      %50 = arith.mulf %48, %49 : vector<16x32xf32>
      %51 = vector.broadcast %29 : vector<1x32xf32> to vector<16x32xf32>
      %52 = arith.mulf %50, %51 : vector<16x32xf32>
      %53 = vector.broadcast %30 : vector<1x32xf32> to vector<16x32xf32>
      %54 = arith.addf %52, %53 : vector<16x32xf32>
      %55 = arith.truncf %54 : vector<16x32xf32> to vector<16x32xbf16>
      %c0_33 = arith.constant 0 : index
      %c0_34 = arith.constant 0 : index
      %c0_35 = arith.constant 0 : index
      %56 = vector.load %arg10[%c0_33, %c0_34, %c0_35] : memref<1x16x32xbf16, #tpu.memory_space<vmem>>, vector<1x16x32xbf16>
      %57 = vector.shape_cast %56 : vector<1x16x32xbf16> to vector<16x32xbf16>
      %58 = vector.shape_cast %55 : vector<16x32xbf16> to vector<1x16x32xbf16>
      tpu.vector_store %arg10[%c0_33, %c0_34, %c0_35], %58 {strides = array<i32>} : memref<1x16x32xbf16, #tpu.memory_space<vmem>>, vector<1x16x32xbf16>,
    } else {
    }
    return
  }
  func.func @transform_0(%arg0: i32, %arg1: i32, %arg2: i32) -> (i32, i32, i32) {
    %c0_i32 = arith.constant 0 : i32
    %c0_i32_0 = arith.constant 0 : i32
    return %arg0, %arg1, %c0_i32 : i32, i32, i32
  }
  func.func @transform_1(%arg0: i32, %arg1: i32, %arg2: i32) -> (i32, i32) {
    %c0_i32 = arith.constant 0 : i32
    %c0_i32_0 = arith.constant 0 : i32
    return %c0_i32, %arg2 : i32, i32
  }
  func.func @transform_2(%arg0: i32, %arg1: i32, %arg2: i32) -> (i32, i32) {
    %c0_i32 = arith.constant 0 : i32
    %c0_i32_0 = arith.constant 0 : i32
    return %c0_i32, %arg2 : i32, i32
  }
  func.func @transform_3(%arg0: i32, %arg1: i32, %arg2: i32) -> (i32, i32) {
    %c0_i32 = arith.constant 0 : i32
    %c0_i32_0 = arith.constant 0 : i32
    return %arg2, %c0_i32 : i32, i32
  }
  func.func @transform_4(%arg0: i32, %arg1: i32, %arg2: i32) -> (i32, i32) {
    %c0_i32 = arith.constant 0 : i32
    %c0_i32_0 = arith.constant 0 : i32
    %c0_i32_1 = arith.constant 0 : i32
    return %c0_i32, %c0_i32_0 : i32, i32
  }
  func.func @transform_5(%arg0: i32, %arg1: i32, %arg2: i32) -> (i32, i32) {
    %c0_i32 = arith.constant 0 : i32
    %c0_i32_0 = arith.constant 0 : i32
    %c0_i32_1 = arith.constant 0 : i32
    return %c0_i32, %c0_i32_0 : i32, i32
  }
  func.func @transform_6(%arg0: i32, %arg1: i32, %arg2: i32) -> (i32, i32) {
    %c0_i32 = arith.constant 0 : i32
    %c0_i32_0 = arith.constant 0 : i32
    %c0_i32_1 = arith.constant 0 : i32
    return %c0_i32, %c0_i32_0 : i32, i32
  }
  func.func @transform_7(%arg0: i32, %arg1: i32, %arg2: i32) -> (i32, i32, i32) {
    %c0_i32 = arith.constant 0 : i32
    %c0_i32_0 = arith.constant 0 : i32
    return %arg0, %arg1, %c0_i32 : i32, i32, i32
  }
}

module attributes {stable_mosaic.version = 11 : i64} {
  func.func @fc_out_kernel(%arg0: i32, %arg1: i32, %arg2: i32, %arg3: memref<1x16x32xbf16, #tpu.memory_space<vmem>>, %arg4: memref<32x64xbf16, #tpu.memory_space<vmem>>, %arg5: memref<1x64xf32, #tpu.memory_space<vmem>>, %arg6: memref<1x16x64xf32, #tpu.memory_space<vmem>>) attributes {dimension_semantics = [#tpu.dimension_semantics<parallel>, #tpu.dimension_semantics<parallel>, #tpu.dimension_semantics<parallel>], iteration_bounds = array<i64: 1, 2, 1>, scalar_prefetch = 0 : i64, scratch_operands = 0 : i64, tpu.core_type = #tpu.core_type<tc>, window_params = [{transform_indices = @transform_0, window_bounds = array<i64: 1, 16, 32>}, {transform_indices = @transform_1, window_bounds = array<i64: 32, 64>}, {transform_indices = @transform_2, window_bounds = array<i64: 1, 64>}, {transform_indices = @transform_3, window_bounds = array<i64: 1, 16, 64>}]} {
    %c0 = arith.constant 0 : index
    %c0_0 = arith.constant 0 : index
    %c0_1 = arith.constant 0 : index
    %0 = vector.load %arg3[%c0, %c0_0, %c0_1] : memref<1x16x32xbf16, #tpu.memory_space<vmem>>, vector<1x16x32xbf16>
    %1 = vector.shape_cast %0 : vector<1x16x32xbf16> to vector<16x32xbf16>
    %c0_2 = arith.constant 0 : index
    %c0_3 = arith.constant 0 : index
    %2 = vector.load %arg4[%c0_2, %c0_3] : memref<32x64xbf16, #tpu.memory_space<vmem>>, vector<32x64xbf16>
    %cst = arith.constant dense<0.000000e+00> : vector<16x64xf32>
    %3 = tpu.matmul %1, %2, %cst {dimension_numbers = #tpu.dot_dimension_numbers<[1], [0], [0], [1], [0, 0, 1, 1], [], []>} : vector<16x32xbf16>, vector<32x64xbf16>, vector<16x64xf32> -> vector<16x64xf32>
    %c0_4 = arith.constant 0 : index
    %c0_5 = arith.constant 0 : index
    %4 = vector.load %arg5[%c0_4, %c0_5] : memref<1x64xf32, #tpu.memory_space<vmem>>, vector<1x64xf32>
    %5 = vector.broadcast %4 : vector<1x64xf32> to vector<16x64xf32>
    %6 = arith.addf %3, %5 : vector<16x64xf32>
    %c0_6 = arith.constant 0 : index
    %c0_7 = arith.constant 0 : index
    %c0_8 = arith.constant 0 : index
    %7 = vector.load %arg6[%c0_6, %c0_7, %c0_8] : memref<1x16x64xf32, #tpu.memory_space<vmem>>, vector<1x16x64xf32>
    %8 = vector.shape_cast %7 : vector<1x16x64xf32> to vector<16x64xf32>
    %9 = vector.shape_cast %6 : vector<16x64xf32> to vector<1x16x64xf32>
    tpu.vector_store %arg6[%c0_6, %c0_7, %c0_8], %9 {strides = array<i32>} : memref<1x16x64xf32, #tpu.memory_space<vmem>>, vector<1x16x64xf32>,
    return
  }
  func.func @transform_0(%arg0: i32, %arg1: i32, %arg2: i32) -> (i32, i32, i32) {
    %c0_i32 = arith.constant 0 : i32
    %c0_i32_0 = arith.constant 0 : i32
    return %arg1, %arg2, %c0_i32 : i32, i32, i32
  }
  func.func @transform_1(%arg0: i32, %arg1: i32, %arg2: i32) -> (i32, i32) {
    %c0_i32 = arith.constant 0 : i32
    %c0_i32_0 = arith.constant 0 : i32
    return %c0_i32, %arg0 : i32, i32
  }
  func.func @transform_2(%arg0: i32, %arg1: i32, %arg2: i32) -> (i32, i32) {
    %c0_i32 = arith.constant 0 : i32
    %c0_i32_0 = arith.constant 0 : i32
    return %c0_i32, %arg0 : i32, i32
  }
  func.func @transform_3(%arg0: i32, %arg1: i32, %arg2: i32) -> (i32, i32, i32) {
    %c0_i32 = arith.constant 0 : i32
    return %arg1, %arg2, %arg0 : i32, i32, i32
  }
}

</mosaic_0001>

<bundles_post_ra>
// kernel: gpt_forward.11
= control target key start
LH: loop header
LB: loop body
LE: loop exit
PB: predicated region body
PF: predicated region fallthrough
CT: control target
= control target key end

     0   :  { %s880_s21 = smov 0   ;;  %s882_s22 = smov 0   ;;  %s963_s0 = inlined_call_operand.vmem [shape: bf16[2,16,32], index: 0, kind: input, shape index: {}]   ;;  %s964_s1 = inlined_call_operand.vmem [shape: bf16[8,16,8], index: 1, kind: input, shape index: {}]   ;;  %s965_s2 = inlined_call_operand.vmem [shape: bf16[4,8,32], index: 2, kind: input, shape index: {}]   ;;  %s966_s3 = inlined_call_operand.vmem [shape: f32[1,32], index: 3, kind: input, shape index: {}]   ;;  %s967_s4 = inlined_call_operand.vmem [shape: f32[1,32], index: 4, kind: input, shape index: {}]   ;;  %s968_s5 = inlined_call_operand.vmem [shape: f32[1,32], index: 5, kind: input, shape index: {}]   ;;  %s969_s6 = inlined_call_operand.vmem [shape: bf16[2,16,32], index: 6, kind: output, shape index: {}]  }
   0x1   :  { %s884_s23 = smov 0  }
   0x2 LB: > { %s35_s24 = sadd.s32 1, %s837_s22  ;;  %p734_p0 = scmp.ge.s32.totalorder %s841_s23, 1  ;;  %s841_s23 = sphi %s884_s23, %s16_s23   ;;  %s837_s22 = sphi %s882_s22, %s971_s22   ;;  %s833_s21 = sphi %s880_s21, %s970_s21  }
   0x3   : > { %p37_p1 = scmp.ge.s32.totalorder %s35_s24, 2  ;;  %p274_p2 = scmp.lt.s32.totalorder %s841_s23, 3 }
   0x5   : > { %s973_s24 = smov (%p37_p1, %s35_s24), 0  ;;  %p275_p3 = pnand %p734_p0, %p274_p2 }
   0x6   : > { %s737_s29 = sshll.u32 (!%p275_p3), %s833_s21, 2  ;;  %p329_p5 = scmp.lt.s32.totalorder (!%p275_p3), %s833_s21, 1 }
   0x7   : > { %278 = sbr.rel (%p275_p3) target bundleno = 467 (0x1d3), region = 44  ;;  %p341_p4 = scmp.lt.s32.totalorder (!%p275_p3), %s737_s29, 7 }
   0xc   : > { %v380_v0 = vld [vmem:[%s965_s2] sm:$0xf]  ;;  %vm390_vm0 = vcmask 1043456   ;;  %v749_v1 = vld [vmem:[%s965_s2 + $0x4] sm:$0xf]  ;;  %vm373_vm1 = vcmask 261120  }
   0xd   : > { %v392_v2 = vsel %vm390_vm0, %v380_v0, 0  ;;  %v429_v3 = vsel %vm390_vm0, %v749_v1, 0  ;;  %v757_v4 = vld [vmem:[%s965_s2 + $0x8] sm:$0xf]  ;;  %v765_v6 = vld [vmem:[%s965_s2 + $0xc] sm:$0xf] }
   0xe   : > { %401 = vmatpush.bf16.msra.mxu0 %v392_v2  ;;  %438 = vmatpush.bf16.msra.mxu1 %v429_v3  ;;  %v465_v5 = vsel %vm390_vm0, %v757_v4, 0  ;;  %s975_s29 = smov (!%p341_p4, %s737_s29), 7  ;;  %v501_v7 = vsel %vm390_vm0, %v765_v6, 0  ;;  %v843_v8 = vmov 0.0   ;;  %vm386_vm2 = vcmask 64512   ;;  %s977_s21 = smov (!%p329_p5, %s833_s21), 1 }
   0xf   : > { %474 = vmatpush.bf16.msra.mxu2 %v465_v5  ;;  %374 = vst.msk [vmem:[#allocation2] sm:$0xff] %vm373_vm1, %v843_v8  ;;  %510 = vmatpush.bf16.msra.mxu3 %v501_v7  ;;  %s774_s10 = sshll.u32 %s975_s29, 3  ;;  %s773_s14 = sshll.u32 %s977_s21, 3  ;;  %v810_v39 = vld [vmem:[%s966_s3] ss:$0 sm:$0xff]  ;;  %v844_v49 = vmov 32.0  }
  0x10   : > { %375 = vst.msk [vmem:[#allocation2 + $0x8] sm:$0xff] %vm373_vm1, %v843_v8  ;;  %s348_s13 = scalar_lea.vmem %s964_s1, %s774_s10  ;;  %s336_s17 = scalar_lea.vmem %s963_s0, %s773_s14  ;;  %813 = vrcp.f32 %v844_v49  ;;  %vm603_vm8 = vcmask 257024  }
  0x11   : > { %v776_v9 = vld [vmem:[%s348_s13] sm:$0xff]  ;;  %v777_v10 = vld [vmem:[%s348_s13 + $0x8] sm:$0xff]  ;;  %v778_v11 = vld [vmem:[%s348_s13 + $0x10] sm:$0xff]  ;;  %s366_s30 = scalar_lea.vmem %s969_s6, %s773_s14 }
  0x12   : > { %v779_v12 = vld [vmem:[%s348_s13 + $0x18] sm:$0xff]  ;;  %746 = vmatmul.msk.bf16.vlgmr.msra.gmra.mxu0 %vm386_vm2, %v776_v9  ;;  %754 = vmatmul.msk.bf16.vlgmr.msra.gmra.mxu1 %vm386_vm2, %v777_v10  ;;  %v781_v34 = vld [vmem:[%s336_s17] sm:$0xff]  }
  0x13   : > { %762 = vmatmul.msk.bf16.vlgmr.msra.gmra.mxu2 %vm386_vm2, %v778_v11  ;;  %770 = vmatmul.msk.bf16.vlgmr.msra.gmra.mxu3 %vm386_vm2, %v779_v12  ;;  %v782_v35 = vunpack.c.l.bf16 %v781_v34  ;;  %v783_v44 = vunpack.c.h.bf16 %v781_v34 }
  0x16   : > { %v376_v13 = vld [vmem:[#allocation2] sm:$0xff]  ;;  %v814_v50 = vpop.eup %813 }
  0x17   : > { %v377_v16 = vld [vmem:[#allocation2 + $0x8] sm:$0xff]  ;;  %v547_v51 = vmul.f32 32.0, %v814_v50  ;;  %vm551_vm3 = vweird.f32 %v814_v50 }
  0x19   : > { %v548_v52 = vsub.f32 1.0, %v547_v51 }
  0x1b   : > { %v549_v53 = vmul.f32 %v814_v50, %v548_v52 }
  0x1d   : > { %v550_v54 = vadd.f32 %v814_v50, %v549_v53 }
  0x1f   : > { %v552_v55 = vsel %vm551_vm3, %v814_v50, %v550_v54 }
  0x8f   : > { %v403_v14 = vpop.f32.mrf.mxu0  ;;  %v440_v17 = vpop.f32.mrf.mxu1 }
  0x90   : > { %v408_v15 = vadd.f32 %v403_v14, %v376_v13 }
  0x92   : > { %411 = vst.msk [vmem:[#allocation2] sm:$0xff] %vm373_vm1, %v408_v15 }
  0x96   : > { %v476_v24 = vpop.f32.mrf.mxu2  ;;  %v512_v30 = vpop.f32.mrf.mxu3 }
  0x97   : > { %v405_v18 = vpop.f32.mrf.mxu0  ;;  %v442_v23 = vpop.f32.mrf.mxu1 }
  0x98   : > { %v409_v19 = vadd.f32 %v405_v18, %v377_v16  ;;  %v811_v16 = vld [vmem:[%s967_s4] ss:$0 sm:$0xff] }
  0x99   : > { %v413_v20 = vld [vmem:[#allocation2] sm:$0xff] }
  0x9a   : > { %v445_v21 = vadd.f32 %v440_v17, %v413_v20  ;;  %412 = vst.msk [vmem:[#allocation2 + $0x8] sm:$0xff] %vm373_vm1, %v409_v19  ;;  %v812_v19 = vld [vmem:[%s968_s5] ss:$0 sm:$0xff] }
  0x9c   : > { %447 = vst.msk [vmem:[#allocation2] sm:$0xff] %vm373_vm1, %v445_v21 }
  0x9e   : > { %v478_v29 = vpop.f32.mrf.mxu2  ;;  %v514_v37 = vpop.f32.mrf.mxu3 }
  0xa1   : > { %v414_v22 = vld [vmem:[#allocation2 + $0x8] sm:$0xff] }
  0xa2   : > { %v446_v25 = vadd.f32 %v442_v23, %v414_v22 }
  0xa3   : > { %v449_v26 = vld [vmem:[#allocation2] sm:$0xff] }
  0xa4   : > { %448 = vst.msk [vmem:[#allocation2 + $0x8] sm:$0xff] %vm373_vm1, %v446_v25  ;;  %v481_v27 = vadd.f32 %v476_v24, %v449_v26 }
  0xa6   : > { %483 = vst.msk [vmem:[#allocation2] sm:$0xff] %vm373_vm1, %v481_v27 }
  0xab   : > { %v450_v28 = vld [vmem:[#allocation2 + $0x8] sm:$0xff] }
  0xac   : > { %v482_v31 = vadd.f32 %v478_v29, %v450_v28 }
  0xad   : > { %v485_v32 = vld [vmem:[#allocation2] sm:$0xff] }
  0xae   : > { %484 = vst.msk [vmem:[#allocation2 + $0x8] sm:$0xff] %vm373_vm1, %v482_v31  ;;  %v517_v33 = vadd.f32 %v512_v30, %v485_v32 }
  0xb0   : > { %519 = vst.msk [vmem:[#allocation2] sm:$0xff] %vm373_vm1, %v517_v33 }
  0xb5   : > { %v486_v36 = vld [vmem:[#allocation2 + $0x8] sm:$0xff] }
  0xb6   : > { %v518_v38 = vadd.f32 %v514_v37, %v486_v36 }
  0xb7   : > { %v528_v40 = vld [vmem:[#allocation2] sm:$0xff] }
  0xb8   : > { %520 = vst.msk [vmem:[#allocation2 + $0x8] sm:$0xff] %vm373_vm1, %v518_v38  ;;  %v530_v41 = vadd.f32 %v782_v35, %v528_v40 }
  0xba   : > { %v536_v42 = vadd.f32 %v810_v39, %v530_v41 }
  0xbc   : > { %v540_v43 = vsel %vm373_vm1, %v536_v42, 0.0 }
  0xbd   : > { %541 = vadd.xlane.f32.xlu0 %v540_v43 }
  0xbf   : > { %v529_v45 = vld [vmem:[#allocation2 + $0x8] sm:$0xff] }
  0xc0   : > { %v531_v46 = vadd.f32 %v783_v44, %v529_v45 }
  0xc2   : > { %v537_v47 = vadd.f32 %v810_v39, %v531_v46 }
  0xc4   : > { %v543_v48 = vsel %vm373_vm1, %v537_v47, 0.0 }
  0xc5   : > { %544 = vadd.xlane.f32.xlu0 %v543_v48 }
 0x130   : > { %v542_v56 = vpop.xlane.xlu0 %541 }
 0x131   : > { %v553_v57 = vmul.f32 %v552_v55, %v542_v56 }
 0x133   : > { %v555_v58 = vsub.f32 %v536_v42, %v553_v57 }
 0x135   : > { %v557_v59 = vmul.f32 %v555_v58, %v555_v58 }
 0x137   : > { %v559_v60 = vsel %vm373_vm1, %v557_v59, 0.0 }
 0x138   : > { %560 = vadd.xlane.f32.xlu1 %v559_v60  ;;  %v545_v61 = vpop.xlane.xlu0 %544 }
 0x139   : > { %v554_v62 = vmul.f32 %v552_v55, %v545_v61 }
 0x13b   : > { %v556_v63 = vsub.f32 %v537_v47, %v554_v62 }
 0x13d   : > { %v558_v0 = vmul.f32 %v556_v63, %v556_v63 }
 0x13f   : > { %v562_v1 = vsel %vm373_vm1, %v558_v0, 0.0 }
 0x140   : > { %563 = vadd.xlane.f32.xlu1 %v562_v1 }
 0x1ab   : > { %v561_v2 = vpop.xlane.xlu1 %560 }
 0x1ac   : > { %v565_v3 = vmul.f32 %v561_v2, %v552_v55 }
 0x1ae   : > { %v567_v4 = vadd.f32 1e-05, %v565_v3 }
 0x1b0   : > { %815 = vrsqrt.f32 %v567_v4  ;;  %vm575_vm5 = vweird.f32 %v567_v4 }
 0x1b3   : > { %v564_v5 = vpop.xlane.xlu1 %563 }
 0x1b4   : > { %v566_v6 = vmul.f32 %v564_v5, %v552_v55 }
 0x1b6   : > { %v816_v7 = vpop.eup %815  ;;  %v568_v8 = vadd.f32 1e-05, %v566_v6 }
 0x1b7   : > { %v570_v9 = vmul.f32 %v816_v7, %v567_v4  ;;  %vm576_vm4 = vweird.f32 %v816_v7 }
 0x1b8   : > { %817 = vrsqrt.f32 %v568_v8  ;;  %vm577_vm6 = vmor %vm575_vm5, %vm576_vm4  ;;  %vm585_vm9 = vweird.f32 %v568_v8 }
 0x1b9   : > { %v571_v10 = vmul.f32 %v816_v7, %v570_v9 }
 0x1bb   : > { %v572_v11 = vmul.f32 0.5, %v571_v10 }
 0x1bd   : > { %v573_v12 = vsub.f32 1.5, %v572_v11 }
 0x1be   : > { %v818_v13 = vpop.eup %817 }
 0x1bf   : > { %v574_v14 = vmul.f32 %v816_v7, %v573_v12  ;;  %v580_v15 = vmul.f32 %v818_v13, %v568_v8  ;;  %vm586_vm7 = vweird.f32 %v818_v13 }
 0x1c0   : > { %vm587_vm10 = vmor %vm585_vm9, %vm586_vm7 }
 0x1c1   : > { %v578_v17 = vsel %vm577_vm6, %v816_v7, %v574_v14  ;;  %v581_v18 = vmul.f32 %v818_v13, %v580_v15 }
 0x1c2   : > { %v589_v20 = vmul.f32 %v578_v17, %v555_v58 }
 0x1c3   : > { %v582_v21 = vmul.f32 0.5, %v581_v18 }
 0x1c4   : > { %v594_v22 = vmul.f32 %v811_v16, %v589_v20 }
 0x1c5   : > { %v583_v23 = vsub.f32 1.5, %v582_v21 }
 0x1c6   : > { %v599_v24 = vadd.f32 %v812_v19, %v594_v22 }
 0x1c7   : > { %v584_v25 = vmul.f32 %v818_v13, %v583_v23 }
 0x1c8   : > { %v601_v26 = vpack.c.bf16 %v599_v24, %v599_v24 }
 0x1c9   : > { %v588_v27 = vsel %vm587_vm10, %v818_v13, %v584_v25 }
 0x1ca   : > { %604 = vst.msk [vmem:[%s366_s30] sm:$0xf] %vm603_vm8, %v601_v26  ;;  %v590_v28 = vmul.f32 %v588_v27, %v556_v63 }
 0x1cc   : > { %v595_v29 = vmul.f32 %v811_v16, %v590_v28 }
 0x1ce   : > { %v600_v30 = vadd.f32 %v812_v19, %v595_v29 }
 0x1d0   : > { %v602_v31 = vpack.c.bf16 %v600_v30, %v600_v30 }
 0x1d2   : > { %605 = vst.msk [vmem:[%s366_s30 + $0x4] sm:$0xf] %vm603_vm8, %v602_v31 }
 0x1d3 PF: > { %s16_s23 = sadd.s32 1, %s841_s23   ;;  %s970_s21 = smov %s837_s22 }
 0x1d4   : > { %p13_p6 = scmp.ge.s32.totalorder %s16_s23, 4   ;;  %s971_s22 = smov %s973_s24 }
 0x1d6   :  { %15 = sbr.rel (!%p13_p6) target bundleno = 2 (0x2), region = 94 }

// kernel: gpt_forward.10
= control target key start
LH: loop header
LB: loop body
LE: loop exit
PB: predicated region body
PF: predicated region fallthrough
CT: control target
= control target key end

     0   :  { %s724_s12 = smov 0   ;;  %s726_s13 = smov 0   ;;  %s788_s0 = inlined_call_operand.vmem [shape: bf16[3,8,16,8], index: 0, kind: input, shape index: {}, may-alias: {0,1,2}]   ;;  %s789_s1 = inlined_call_operand.vmem [shape: bf16[3,8,16,8], index: 1, kind: input, shape index: {}, may-alias: {0,1,2}]   ;;  %s790_s2 = inlined_call_operand.vmem [shape: bf16[3,8,16,8], index: 2, kind: input, shape index: {}, may-alias: {0,1,2}]   ;;  %s791_s3 = inlined_call_operand.vmem [shape: bf16[8,16,8], index: 3, kind: output, shape index: {}]  }
   0x1   :  { %s728_s14 = smov 0  }
   0x2 LB: > { %s32_s15 = sadd.s32 1, %s695_s13  ;;  %p599_p0 = scmp.ge.s32.totalorder %s699_s14, 1  ;;  %s699_s14 = sphi %s728_s14, %s13_s14   ;;  %s695_s13 = sphi %s726_s13, %s793_s13   ;;  %s691_s12 = sphi %s724_s12, %s792_s12  }
   0x3   : > { %p34_p1 = scmp.ge.s32.totalorder %s32_s15, 8  ;;  %p201_p2 = scmp.lt.s32.totalorder %s699_s14, 9 }
   0x5   : > { %s795_s15 = smov (%p34_p1, %s32_s15), 0  ;;  %p202_p3 = pnand %p599_p0, %p201_p2 }
   0x6   : > { %p254_p4 = scmp.lt.s32.totalorder (!%p202_p3), %s691_s12, 7 }
   0x7   : > { %205 = sbr.rel (%p202_p3) target bundleno = 657 (0x291), region = 32 }
   0xc   : > { %vm305_vm0 = vcmask 64512   ;;  %v701_v0 = vmov 0.0   ;;  %s797_s12 = smov (!%p254_p4, %s691_s12), 7  ;;  %vm300_vm1 = vcmask 7168   ;;  %v702_v4 = vmov -inf  }
   0xd   : > { %306 = vst.msk [vmem:[#allocation4] sm:$0xff] %vm305_vm0, %v701_v0  ;;  %s744_s16 = sshll.u32 %s797_s12, 3  ;;  %vm345_vm2 = vcmask 130048   ;;  %v703_v9 = vmov 0   ;;  %vm460_vm3 = vcmask 60416  }
   0xe   : > { %307 = vst.msk [vmem:[#allocation4 + $0x8] sm:$0xff] %vm305_vm0, %v701_v0  ;;  %s532_s19 = scalar_lea.vmem %s789_s1, %s744_s16  ;;  %s261_s22 = scalar_lea.vmem %s788_s0, %s744_s16  ;;  %662 = vset.pattern.permute.xlu1 %v703_v9  ;;  %663 = vset.pattern.permute.xlu0 %v703_v9 }
   0xf   : > { %v633_v1 = vld [vmem:[%s532_s19 + $0x40] sm:$0xff]  ;;  %301 = vst.msk [vmem:[#allocation2] sm:$0xff] %vm300_vm1, %v702_v4  ;;  %664 = vset.pattern.permute.xlu2 %v703_v9  ;;  %s537_s25 = scalar_lea.vmem %s790_s2, %s744_s16  ;;  %s293_s28 = scalar_lea.vmem %s791_s3, %s744_s16 }
  0x10   : > { %v327_v2 = vsel %vm305_vm0, %v633_v1, 0  ;;  %v632_v3 = vld [vmem:[%s261_s22] sm:$0xff]  ;;  %302 = vst.msk [vmem:[#allocation2 + $0x8] sm:$0xff] %vm300_vm1, %v702_v4 }
  0x11   : > { %336 = vmatpush.bf16.xpose.msra.mxu0 %v327_v2  ;;  %303 = vst.msk [vmem:[#allocation3] sm:$0xff] %vm300_vm1, %v701_v0  ;;  %v634_v22 = vld [vmem:[%s537_s25 + $0x80] sm:$0xff] }
  0x12   : > { %304 = vst.msk [vmem:[#allocation3 + $0x8] sm:$0xff] %vm300_vm1, %v701_v0  ;;  %424 = vmatpush.bf16.msra.mxu1 %v634_v22 }
  0x14   : > { %v391_v43 = vld [vmem:[#allocation4] sm:$0xff] }
  0x15   : > { %v392_v50 = vld [vmem:[#allocation4 + $0x8] sm:$0xff] }
  0x16   : > { %v343_v10 = vld [vmem:[#allocation2] sm:$0xff] }
  0x17   : > { %v344_v15 = vld [vmem:[#allocation2 + $0x8] sm:$0xff] }
  0x18   : > { %618 = vmatmul.msk.bf16.vlgmr.msra.gmra.mxu0 %vm305_vm0, %v632_v3  ;;  %v376_v34 = vld [vmem:[#allocation3] sm:$0xff] }
  0x19   : > { %v377_v38 = vld [vmem:[#allocation3 + $0x8] sm:$0xff] }
  0x95   : > { %v338_v5 = vpop.f32.mrf.mxu0 }
  0x96   : > { %v346_v6 = vsel %vm345_vm2, %v338_v5, -inf }
  0x97   : > { %347 = vmax.xlane.f32.xlu0 %v346_v6 }
  0x9d   : > { %v340_v7 = vpop.f32.mrf.mxu0 }
  0x9e   : > { %v349_v8 = vsel %vm345_vm2, %v340_v7, -inf }
  0x9f   : > { %350 = vmax.xlane.f32.xlu0 %v349_v8 }
 0x10a   : > { %v348_v11 = vpop.xlane.xlu0 %347 }
 0x10b   : > { %v352_v12 = vmax.f32 %v343_v10, %v348_v11 }
 0x10d   : > { %v354_v13 = vsub.f32 %v343_v10, %v352_v12  ;;  %435 = vst.msk [vmem:[#allocation2] sm:$0xff] %vm300_vm1, %v352_v12  ;;  %362 = vperm.xlu1 %662, %v352_v12  }
 0x10f   : > { %v356_v14 = vmul.f32 1.442695, %v354_v13 }
 0x111   : > { %665 = vpow2.f32 %v356_v14 }
 0x112   : > { %v351_v16 = vpop.xlane.xlu0 %350 }
 0x113   : > { %v353_v17 = vmax.f32 %v344_v15, %v351_v16 }
 0x115   : > { %v355_v18 = vsub.f32 %v344_v15, %v353_v17  ;;  %436 = vst.msk [vmem:[#allocation2 + $0x8] sm:$0xff] %vm300_vm1, %v353_v17  ;;  %367 = vperm.xlu1 %662, %v353_v17  }
 0x117   : > { %v666_v19 = vpop.eup %665  ;;  %v358_v20 = vmul.f32 1.442695, %v355_v18 }
 0x118   : > { %395 = vperm.xlu0 %663, %v666_v19   ;;  %v378_v35 = vmul.f32 %v666_v19, %v376_v34 }
 0x119   : > { %667 = vpow2.f32 %v358_v20 }
 0x11f   : > { %v668_v21 = vpop.eup %667 }
 0x120   : > { %400 = vperm.xlu1 %662, %v668_v21   ;;  %v379_v39 = vmul.f32 %v668_v21, %v377_v38 }
 0x17f   : > { %v363_v23 = vpop.permute.xlu1 %362 }
 0x180   : > { %v370_v24 = vsub.f32 %v338_v5, %v363_v23 }
 0x182   : > { %v372_v25 = vmul.f32 1.442695, %v370_v24 }
 0x184   : > { %669 = vpow2.f32 %v372_v25 }
 0x187   : > { %v368_v26 = vpop.permute.xlu1 %367 }
 0x188   : > { %v371_v27 = vsub.f32 %v340_v7, %v368_v26 }
 0x18a   : > { %v670_v28 = vpop.eup %669  ;;  %v374_v29 = vmul.f32 1.442695, %v371_v27  ;;  %v396_v44 = vpop.permute.xlu0 %395 }
 0x18b   : > { %v380_v30 = vsel %vm345_vm2, %v670_v28, 0.0  ;;  %v403_v46 = vmul.f32 %v396_v44, %v391_v43 }
 0x18c   : > { %671 = vpow2.f32 %v374_v29  ;;  %381 = vadd.xlane.f32.xlu2 %v380_v30 }
 0x192   : > { %v672_v31 = vpop.eup %671  ;;  %v401_v51 = vpop.permute.xlu1 %400 }
 0x193   : > { %v383_v32 = vsel %vm345_vm2, %v672_v31, 0.0  ;;  %v405_v33 = vpack.c.bf16 %v672_v31, %v670_v28  ;;  %v404_v53 = vmul.f32 %v401_v51, %v392_v50 }
 0x194   : > { %384 = vadd.xlane.f32.xlu2 %v383_v32 }
 0x195   : > { %625 = vmatmul.msk.bf16.vlgmr.msra.gmra.mxu1 %vm345_vm2, %v405_v33 }
 0x1ff   : > { %v382_v36 = vpop.xlane.xlu2 %381 }
 0x200   : > { %v386_v37 = vadd.f32 %v382_v36, %v378_v35 }
 0x202   : > { %389 = vst.msk [vmem:[#allocation3] sm:$0xff] %vm300_vm1, %v386_v37 }
 0x207   : > { %v385_v40 = vpop.xlane.xlu2 %384 }
 0x208   : > { %v387_v41 = vadd.f32 %v385_v40, %v379_v39 }
 0x209   : > { %v442_v42 = vld [vmem:[#allocation3] sm:$0xff] }
 0x20a   : > { %390 = vst.msk [vmem:[#allocation3 + $0x8] sm:$0xff] %vm300_vm1, %v387_v41  ;;  %673 = vrcp.f32 %v442_v42 }
 0x210   : > { %v674_v45 = vpop.eup %673 }
 0x211   : > { %448 = vperm.xlu2 %664, %v674_v45   ;;  %v443_v47 = vld [vmem:[#allocation3 + $0x8] sm:$0xff] }
 0x212   : > { %v426_v48 = vpop.f32.mrf.mxu1  ;;  %675 = vrcp.f32 %v443_v47 }
 0x213   : > { %v431_v49 = vadd.f32 %v426_v48, %v403_v46 }
 0x215   : > { %433 = vst.msk [vmem:[#allocation4] sm:$0xff] %vm305_vm0, %v431_v49 }
 0x218   : > { %v676_v52 = vpop.eup %675 }
 0x219   : > { %453 = vperm.xlu1 %662, %v676_v52  }
 0x21a   : > { %v428_v54 = vpop.f32.mrf.mxu1 }
 0x21b   : > { %v432_v55 = vadd.f32 %v428_v54, %v404_v53 }
 0x21c   : > { %v440_v57 = vld [vmem:[#allocation4] sm:$0xff] }
 0x21d   : > { %434 = vst.msk [vmem:[#allocation4 + $0x8] sm:$0xff] %vm305_vm0, %v432_v55 }
 0x224   : > { %v441_v60 = vld [vmem:[#allocation4 + $0x8] sm:$0xff] }
 0x26b   : > { %v449_v56 = vpop.permute.xlu2 %448 }
 0x26c   : > { %v456_v58 = vmul.f32 %v449_v56, %v440_v57 }
 0x26e   : > { %v458_v59 = vpack.c.bf16 %v456_v58, %v456_v58 }
 0x270   : > { %461 = vst.msk [vmem:[%s293_s28] sm:$0xf] %vm460_vm3, %v458_v59 }
 0x28b   : > { %v454_v61 = vpop.permute.xlu1 %453 }
 0x28c   : > { %v457_v62 = vmul.f32 %v454_v61, %v441_v60 }
 0x28e   : > { %v459_v63 = vpack.c.bf16 %v457_v62, %v457_v62 }
 0x290   : > { %462 = vst.msk [vmem:[%s293_s28 + $0x4] sm:$0xf] %vm460_vm3, %v459_v63 }
 0x291 PF: > { %s13_s14 = sadd.s32 1, %s699_s14   ;;  %s792_s12 = smov %s695_s13 }
 0x292   : > { %p10_p5 = scmp.ge.s32.totalorder %s13_s14, 10   ;;  %s793_s13 = smov %s795_s15 }
 0x294   :  { %12 = sbr.rel (!%p10_p5) target bundleno = 2 (0x2), region = 76 }

// kernel: gpt_forward.12
= control target key start
LH: loop header
LB: loop body
LE: loop exit
PB: predicated region body
PF: predicated region fallthrough
CT: control target
= control target key end

     0   :  { %s866_s24 = smov 0   ;;  %s868_s25 = smov 0   ;;  %s945_s0 = inlined_call_operand.vmem [shape: bf16[2,16,32], index: 0, kind: input, shape index: {}]   ;;  %s946_s1 = inlined_call_operand.vmem [shape: bf16[32,64], index: 1, kind: input, shape index: {}]   ;;  %s947_s2 = inlined_call_operand.vmem [shape: f32[1,64], index: 2, kind: input, shape index: {}]   ;;  %s948_s3 = inlined_call_operand.vmem [shape: bf16[64,32], index: 3, kind: input, shape index: {}]   ;;  %s949_s4 = inlined_call_operand.vmem [shape: f32[1,32], index: 4, kind: input, shape index: {}]   ;;  %s950_s5 = inlined_call_operand.vmem [shape: f32[1,32], index: 5, kind: input, shape index: {}]   ;;  %s951_s6 = inlined_call_operand.vmem [shape: f32[1,32], index: 6, kind: input, shape index: {}]   ;;  %s952_s7 = inlined_call_operand.vmem [shape: bf16[2,16,32], index: 7, kind: output, shape index: {}]  }
   0x1   :  { %s870_s26 = smov 0  }
   0x2 LB: > { %s36_s27 = sadd.s32 1, %s818_s25  ;;  %p714_p0 = scmp.ge.s32.totalorder %s822_s26, 1  ;;  %s822_s26 = sphi %s870_s26, %s17_s26   ;;  %s818_s25 = sphi %s868_s25, %s954_s25   ;;  %s814_s24 = sphi %s866_s24, %s953_s24  }
   0x3   : > { %p38_p1 = scmp.ge.s32.totalorder %s36_s27, 2  ;;  %p293_p2 = scmp.lt.s32.totalorder %s822_s26, 3 }
   0x5   : > { %s956_s27 = smov (%p38_p1, %s36_s27), 0  ;;  %p294_p3 = pnand %p714_p0, %p293_p2 }
   0x6   : > { %p346_p4 = scmp.lt.s32.totalorder (!%p294_p3), %s814_s24, 1 }
   0x7   : > { %297 = sbr.rel (%p294_p3) target bundleno = 579 (0x243), region = 48 }
   0xc   : > { %v755_v0 = vld [vmem:[%s946_s1 + $0x8] sm:$0xff]  ;;  %v754_v1 = vld [vmem:[%s946_s1] sm:$0xff]  ;;  %s958_s24 = smov (!%p346_p4, %s814_s24), 1  ;;  %vm383_vm0 = vcmask 261120   ;;  %v759_v3 = vld [vmem:[%s948_s3 + $0x18] sm:$0xff]  ;;  %v824_v7 = vmov 0.0  }
   0xd   : > { %423 = vmatpush.bf16.msra.mxu0 %v755_v0  ;;  %s751_s9 = sshll.u32 %s958_s24, 3  ;;  %476 = vmatpush.bf16.msra.mxu1 %v759_v3  ;;  %v758_v4 = vld [vmem:[%s948_s3 + $0x10] sm:$0xff]  ;;  %v757_v5 = vld [vmem:[%s948_s3 + $0x8] sm:$0xff]  ;;  %v756_v6 = vld [vmem:[%s948_s3] sm:$0xff]  ;;  %384 = vst.msk [vmem:[#allocation2] sm:$0xff] %vm383_vm0, %v824_v7  ;;  %vm468_vm1 = vcmask 523264  }
   0xe   : > { %s353_s12 = scalar_lea.vmem %s945_s0, %s751_s9  ;;  %385 = vst.msk [vmem:[#allocation2 + $0x8] sm:$0xff] %vm383_vm0, %v824_v7  ;;  %v790_v9 = vld [vmem:[%s947_s2] ss:$0 sm:$0xff]  ;;  %v825_v34 = vmov 32.0   ;;  %s376_s13 = scalar_lea.vmem %s952_s7, %s751_s9  ;;  %vm572_vm7 = vcmask 257024  }
   0xf   : > { %v753_v2 = vld [vmem:[%s353_s12] sm:$0xff]  ;;  %794 = vrcp.f32 %v825_v34 }
  0x10   : > { %v761_v19 = vld [vmem:[%s353_s12] sm:$0xff]  }
  0x11   : > { %424 = vmatpush.bf16.msra.mxu0 %v754_v1  ;;  %477 = vmatpush.bf16.msra.mxu1 %v758_v4  ;;  %v762_v21 = vunpack.c.l.bf16 %v761_v19  ;;  %v791_v24 = vld [vmem:[%s949_s4] ss:$0 sm:$0xff]  ;;  %v763_v29 = vunpack.c.h.bf16 %v761_v19 }
  0x12   : > { %v792_v1 = vld [vmem:[%s950_s5] ss:$0 sm:$0xff] }
  0x13   : > { %v793_v4 = vld [vmem:[%s951_s6] ss:$0 sm:$0xff] }
  0x14   : > { %731 = vmatmul.msk.bf16.vlgmr.msra.gmra.mxu0 %vm383_vm0, %v753_v2  ;;  %v434_v16 = vld [vmem:[#allocation2] sm:$0xff] }
  0x15   : > { %478 = vmatpush.bf16.msra.mxu1 %v757_v5  ;;  %v435_v20 = vld [vmem:[#allocation2 + $0x8] sm:$0xff]  ;;  %v795_v35 = vpop.eup %794 }
  0x16   : > { %v516_v36 = vmul.f32 32.0, %v795_v35  ;;  %vm520_vm2 = vweird.f32 %v795_v35 }
  0x18   : > { %v517_v37 = vsub.f32 1.0, %v516_v36 }
  0x19   : > { %479 = vmatpush.bf16.msra.mxu1 %v756_v6 }
  0x1a   : > { %v518_v38 = vmul.f32 %v795_v35, %v517_v37 }
  0x1c   : > { %v519_v39 = vadd.f32 %v795_v35, %v518_v38 }
  0x1e   : > { %v521_v40 = vsel %vm520_vm2, %v795_v35, %v519_v39 }
  0x91   : > { %v426_v8 = vpop.f32.mrf.mxu0 }
  0x92   : > { %v427_v10 = vadd.f32 %v790_v9, %v426_v8 }
  0x94   : > { %v431_v13 = vmax.f32 %v427_v10, 0.0 }
  0x99   : > { %v428_v11 = vpop.f32.mrf.mxu0 }
  0x9a   : > { %v429_v12 = vadd.f32 %v790_v9, %v428_v11 }
  0x9c   : > { %v432_v14 = vmax.f32 %v429_v12, 0.0 }
  0x9e   : > { %v433_v15 = vpack.c.bf16 %v432_v14, %v431_v13 }
  0xa0   : > { %748 = vmatmul.msk.bf16.vlgmr.msra.gmra.mxu1 %vm468_vm1, %v433_v15 }
 0x11d   : > { %v481_v17 = vpop.f32.mrf.mxu1 }
 0x11e   : > { %v486_v18 = vadd.f32 %v481_v17, %v434_v16 }
 0x120   : > { %488 = vst.msk [vmem:[#allocation2] sm:$0xff] %vm383_vm0, %v486_v18 }
 0x125   : > { %v483_v22 = vpop.f32.mrf.mxu1 }
 0x126   : > { %v487_v23 = vadd.f32 %v483_v22, %v435_v20 }
 0x127   : > { %v497_v25 = vld [vmem:[#allocation2] sm:$0xff] }
 0x128   : > { %489 = vst.msk [vmem:[#allocation2 + $0x8] sm:$0xff] %vm383_vm0, %v487_v23  ;;  %v499_v26 = vadd.f32 %v762_v21, %v497_v25 }
 0x12a   : > { %v505_v27 = vadd.f32 %v791_v24, %v499_v26 }
 0x12c   : > { %v509_v28 = vsel %vm383_vm0, %v505_v27, 0.0 }
 0x12d   : > { %510 = vadd.xlane.f32.xlu0 %v509_v28 }
 0x12f   : > { %v498_v30 = vld [vmem:[#allocation2 + $0x8] sm:$0xff] }
 0x130   : > { %v500_v31 = vadd.f32 %v763_v29, %v498_v30 }
 0x132   : > { %v506_v32 = vadd.f32 %v791_v24, %v500_v31 }
 0x134   : > { %v512_v33 = vsel %vm383_vm0, %v506_v32, 0.0 }
 0x135   : > { %513 = vadd.xlane.f32.xlu0 %v512_v33 }
 0x1a0   : > { %v511_v41 = vpop.xlane.xlu0 %510 }
 0x1a1   : > { %v522_v42 = vmul.f32 %v521_v40, %v511_v41 }
 0x1a3   : > { %v524_v43 = vsub.f32 %v505_v27, %v522_v42 }
 0x1a5   : > { %v526_v44 = vmul.f32 %v524_v43, %v524_v43 }
 0x1a7   : > { %v528_v45 = vsel %vm383_vm0, %v526_v44, 0.0 }
 0x1a8   : > { %529 = vadd.xlane.f32.xlu1 %v528_v45  ;;  %v514_v46 = vpop.xlane.xlu0 %513 }
 0x1a9   : > { %v523_v47 = vmul.f32 %v521_v40, %v514_v46 }
 0x1ab   : > { %v525_v48 = vsub.f32 %v506_v32, %v523_v47 }
 0x1ad   : > { %v527_v49 = vmul.f32 %v525_v48, %v525_v48 }
 0x1af   : > { %v531_v50 = vsel %vm383_vm0, %v527_v49, 0.0 }
 0x1b0   : > { %532 = vadd.xlane.f32.xlu1 %v531_v50 }
 0x21b   : > { %v530_v51 = vpop.xlane.xlu1 %529 }
 0x21c   : > { %v534_v52 = vmul.f32 %v530_v51, %v521_v40 }
 0x21e   : > { %v536_v53 = vadd.f32 1e-05, %v534_v52 }
 0x220   : > { %796 = vrsqrt.f32 %v536_v53  ;;  %vm544_vm4 = vweird.f32 %v536_v53 }
 0x223   : > { %v533_v54 = vpop.xlane.xlu1 %532 }
 0x224   : > { %v535_v55 = vmul.f32 %v533_v54, %v521_v40 }
 0x226   : > { %v797_v56 = vpop.eup %796  ;;  %v537_v57 = vadd.f32 1e-05, %v535_v55 }
 0x227   : > { %v539_v58 = vmul.f32 %v797_v56, %v536_v53  ;;  %vm545_vm3 = vweird.f32 %v797_v56 }
 0x228   : > { %798 = vrsqrt.f32 %v537_v57  ;;  %vm546_vm5 = vmor %vm544_vm4, %vm545_vm3  ;;  %vm554_vm8 = vweird.f32 %v537_v57 }
 0x229   : > { %v540_v59 = vmul.f32 %v797_v56, %v539_v58 }
 0x22b   : > { %v541_v60 = vmul.f32 0.5, %v540_v59 }
 0x22d   : > { %v542_v61 = vsub.f32 1.5, %v541_v60 }
 0x22e   : > { %v799_v62 = vpop.eup %798 }
 0x22f   : > { %v543_v63 = vmul.f32 %v797_v56, %v542_v61  ;;  %v549_v0 = vmul.f32 %v799_v62, %v537_v57  ;;  %vm555_vm6 = vweird.f32 %v799_v62 }
 0x230   : > { %vm556_vm9 = vmor %vm554_vm8, %vm555_vm6 }
 0x231   : > { %v547_v2 = vsel %vm546_vm5, %v797_v56, %v543_v63  ;;  %v550_v3 = vmul.f32 %v799_v62, %v549_v0 }
 0x232   : > { %v558_v5 = vmul.f32 %v547_v2, %v524_v43 }
 0x233   : > { %v551_v6 = vmul.f32 0.5, %v550_v3 }
 0x234   : > { %v563_v7 = vmul.f32 %v792_v1, %v558_v5 }
 0x235   : > { %v552_v8 = vsub.f32 1.5, %v551_v6 }
 0x236   : > { %v568_v9 = vadd.f32 %v793_v4, %v563_v7 }
 0x237   : > { %v553_v10 = vmul.f32 %v799_v62, %v552_v8 }
 0x238   : > { %v570_v11 = vpack.c.bf16 %v568_v9, %v568_v9 }
 0x239   : > { %v557_v12 = vsel %vm556_vm9, %v799_v62, %v553_v10 }
 0x23a   : > { %573 = vst.msk [vmem:[%s376_s13] sm:$0xf] %vm572_vm7, %v570_v11  ;;  %v559_v13 = vmul.f32 %v557_v12, %v525_v48 }
 0x23c   : > { %v564_v14 = vmul.f32 %v792_v1, %v559_v13 }
 0x23e   : > { %v569_v15 = vadd.f32 %v793_v4, %v564_v14 }
 0x240   : > { %v571_v16 = vpack.c.bf16 %v569_v15, %v569_v15 }
 0x242   : > { %574 = vst.msk [vmem:[%s376_s13 + $0x4] sm:$0xf] %vm572_vm7, %v571_v16 }
 0x243 PF: > { %s17_s26 = sadd.s32 1, %s822_s26   ;;  %s953_s24 = smov %s818_s25 }
 0x244   : > { %p14_p5 = scmp.ge.s32.totalorder %s17_s26, 4   ;;  %s954_s25 = smov %s956_s27 }
 0x246   :  { %16 = sbr.rel (!%p14_p5) target bundleno = 2 (0x2), region = 95 }

// kernel: gpt_forward.9
= control target key start
LH: loop header
LB: loop body
LE: loop exit
PB: predicated region body
PF: predicated region fallthrough
CT: control target
= control target key end

     0   :  { %s1351_s12 = smov 0   ;;  %s1353_s13 = smov 0   ;;  %s1603_s0 = inlined_call_operand.vmem [shape: bf16[2,16,32], index: 0, kind: input, shape index: {}]   ;;  %s1604_s1 = inlined_call_operand.vmem [shape: bf16[3,4,32,8], index: 1, kind: input, shape index: {}]   ;;  %s1605_s2 = inlined_call_operand.vmem [shape: f32[3,4,1,8], index: 2, kind: input, shape index: {}]   ;;  %s1606_s3 = inlined_call_operand.vmem [shape: bf16[3,8,16,8], index: 3, kind: output, shape index: {}]  }
   0x1   :  { %s1355_s14 = smov 0   ;;  %s1357_s15 = smov 0  }
   0x2   :  { %s1359_s16 = smov 0  }
   0x3 LB: > { %s1007_s17 = sadd.s32 4294967295, %s1329_s16   ;;  %s32_s18 = sadd.s32 1, %s1325_s15  ;;  %s1329_s16 = sphi %s1359_s16, %s13_s16   ;;  %s1325_s15 = sphi %s1357_s15, %s1611_s15   ;;  %s1321_s14 = sphi %s1355_s14, %s1610_s14   ;;  %s1317_s13 = sphi %s1353_s13, %s1609_s13   ;;  %s1313_s12 = sphi %s1351_s12, %s1608_s12  }
   0x4   : > { %p34_p0 = scmp.ge.s32.totalorder %s32_s18, 2  ;;  %s123_s19 = sadd.s32 1, %s1317_s13 }
   0x5   : > { %p133_p1 = scmp.ne.s32.totalorder %s1317_s13, %s1313_s12  ;;  %p134_p2 = scmp.eq.s32.totalorder %s1007_s17, 1 }
   0x6   : > { %s1613_s18 = smov (%p34_p0, %s32_s18), 0  ;;  %p1013_p4 = scmp.ge.s32.totalorder %s1329_s16, 1 }
   0x7   : > { %p1383_p3 = por %p134_p2, %p133_p1  ;;  %s118_s21 = ssub.s32 %s1325_s15, %s1613_s18 }
   0x8   : > { %p189_p5 = scmp.lt.s32.totalorder %s1329_s16, 3  ;;  %p121_p6 = scmp.eq.s32.totalorder %s118_s21, 0 }
   0xa   : > { %p190_p7 = pnand %p1013_p4, %p189_p5 }
   0xb   : > { %s1392_s22 = scalar_select %p121_p6, %s1317_s13, %s123_s19  }
   0xc   : > { %193 = sbr.rel (%p190_p7) target bundleno = 212 (0xd4), region = 32  ;;  %p227_p8 = scmp.lt.s32.totalorder (!%p190_p7), %s1321_s14, 1 }
   0xd   : > { %s223_s11 = sand.u32 (!%p190_p7), 1, %s1313_s12  }
   0xe   : > { %s1238_s24 = smul.u32 (!%p190_p7), 96, %s223_s11 }
  0x11   : > { %v1213_v0 = vld [vmem:[%s1604_s1 + $0x8] sm:$0xff]  ;;  %v1215_v1 = vld [vmem:[%s1604_s1 + $0x18] sm:$0xff]  ;;  %v1212_v4 = vld [vmem:[%s1604_s1] sm:$0xff]  ;;  %s228_s8 = scalar_select %p227_p8, %s1321_s14, 1  ;;  %vm279_vm0 = vcmask 261120   ;;  %vm301_vm1 = vcmask 60416  }
  0x12   : > { %v1217_v2 = vld [vmem:[%s1604_s1 + $0x28] sm:$0xff]  ;;  %v1219_v3 = vld [vmem:[%s1604_s1 + $0x38] sm:$0xff]  ;;  %289 = vmatpush.bf16.msra.mxu0 %v1213_v0  ;;  %332 = vmatpush.bf16.msra.mxu1 %v1215_v1  ;;  %v1214_v5 = vld [vmem:[%s1604_s1 + $0x10] sm:$0xff]  ;;  %s1237_s26 = sshll.u32 (%p1383_p3), %s1321_s14, 5 }
  0x13   : > { %375 = vmatpush.bf16.msra.mxu2 %v1217_v2  ;;  %418 = vmatpush.bf16.msra.mxu3 %v1219_v3  ;;  %v1216_v6 = vld [vmem:[%s1604_s1 + $0x20] sm:$0xff]  ;;  %v1218_v7 = vld [vmem:[%s1604_s1 + $0x30] sm:$0xff]  ;;  %s1210_s19 = sshll.u32 %s228_s8, 3  ;;  %v1225_v8 = vld [vmem:[%s1604_s1 + $0x68] sm:$0xff]  ;;  %s774_s29 = scalar_lea.vmem (%p1383_p3), %s1606_s3, %s1237_s26 }
  0x14   : > { %v1227_v9 = vld [vmem:[%s1604_s1 + $0x78] sm:$0xff]  ;;  %s234_s28 = scalar_lea.vmem %s1603_s0, %s1210_s19  ;;  %v1221_v11 = vld [vmem:[%s1604_s1 + $0x48] sm:$0xff]  ;;  %v1224_v13 = vld [vmem:[%s1604_s1 + $0x60] sm:$0xff] }
  0x15   : > { %v1211_v10 = vld [vmem:[%s234_s28] sm:$0xff]  ;;  %v1223_v12 = vld [vmem:[%s1604_s1 + $0x58] sm:$0xff]  ;;  %v1226_v14 = vld [vmem:[%s1604_s1 + $0x70] sm:$0xff]  ;;  %s1496_s28 = scalar_lea.vmem [#allocation2], %s1238_s24 }
  0x16   : > { %290 = vmatpush.bf16.msra.mxu0 %v1212_v4  ;;  %333 = vmatpush.bf16.msra.mxu1 %v1214_v5  ;;  %v1233_v15 = vld [vmem:[%s1604_s1 + $0xa8] sm:$0xff]  ;;  %v1235_v16 = vld [vmem:[%s1604_s1 + $0xb8] sm:$0xff]  ;;  %v1220_v17 = vld [vmem:[%s1604_s1 + $0x40] sm:$0xff] }
  0x17   : > { %376 = vmatpush.bf16.msra.mxu2 %v1216_v6  ;;  %419 = vmatpush.bf16.msra.mxu3 %v1218_v7  ;;  %v1222_v18 = vld [vmem:[%s1604_s1 + $0x50] sm:$0xff]  ;;  %v1229_v19 = vld [vmem:[%s1604_s1 + $0x88] sm:$0xff]  ;;  %v1231_v20 = vld [vmem:[%s1604_s1 + $0x98] sm:$0xff] }
  0x18   : > { %v1232_v21 = vld [vmem:[%s1604_s1 + $0xa0] sm:$0xff]  ;;  %v1234_v22 = vld [vmem:[%s1604_s1 + $0xb0] sm:$0xff] }
  0x19   : > { %1028 = vmatmul.msk.bf16.vlgmr.msra.gmra.mxu0 %vm279_vm0, %v1211_v10  ;;  %1042 = vmatmul.msk.bf16.vlgmr.msra.gmra.mxu1 %vm279_vm0, %v1211_v10  ;;  %v1228_v23 = vld [vmem:[%s1604_s1 + $0x80] sm:$0xff]  ;;  %v1230_v24 = vld [vmem:[%s1604_s1 + $0x90] sm:$0xff] }
  0x1a   : > { %1058 = vmatmul.msk.bf16.vlgmr.msra.gmra.mxu2 %vm279_vm0, %v1211_v10  ;;  %1074 = vmatmul.msk.bf16.vlgmr.msra.gmra.mxu3 %vm279_vm0, %v1211_v10  ;;  %v1279_v25 = vld [vmem:[%s1605_s2] ss:$0 sm:$0xff]  ;;  %v1280_v26 = vld [vmem:[%s1605_s2 + $0x1] ss:$0 sm:$0xff]  ;;  %v1281_v33 = vld [vmem:[%s1605_s2 + $0x2] ss:$0 sm:$0xff] }
  0x1b   : > { %543 = vmatpush.bf16.msrb.mxu2 %v1225_v8  ;;  %584 = vmatpush.bf16.msrb.mxu3 %v1227_v9  ;;  %v1282_v34 = vld [vmem:[%s1605_s2 + $0x3] ss:$0 sm:$0xff]  ;;  %v1283_v53 = vld [vmem:[%s1605_s2 + $0x4] ss:$0 sm:$0xff]  ;;  %v1284_v54 = vld [vmem:[%s1605_s2 + $0x5] ss:$0 sm:$0xff] }
  0x1c   : > { %461 = vmatpush.bf16.msrb.mxu0 %v1221_v11  ;;  %502 = vmatpush.bf16.msrb.mxu1 %v1223_v12  ;;  %v1285_v5 = vld [vmem:[%s1605_s2 + $0x6] ss:$0 sm:$0xff]  ;;  %v1286_v6 = vld [vmem:[%s1605_s2 + $0x7] ss:$0 sm:$0xff] }
  0x1f   : > { %544 = vmatpush.bf16.msrb.mxu2 %v1224_v13  ;;  %585 = vmatpush.bf16.msrb.mxu3 %v1226_v14 }
  0x20   : > { %462 = vmatpush.bf16.msrb.mxu0 %v1220_v17  ;;  %503 = vmatpush.bf16.msrb.mxu1 %v1222_v18 }
  0x23   : > { %707 = vmatpush.bf16.msra.mxu2 %v1233_v15  ;;  %748 = vmatpush.bf16.msra.mxu3 %v1235_v16 }
  0x24   : > { %625 = vmatpush.bf16.msra.mxu0 %v1229_v19  ;;  %666 = vmatpush.bf16.msra.mxu1 %v1231_v20  ;;  %v1287_v19 = vld [vmem:[%s1605_s2 + $0x8] ss:$0 sm:$0xff]  ;;  %v1288_v20 = vld [vmem:[%s1605_s2 + $0x9] ss:$0 sm:$0xff] }
  0x27   : > { %708 = vmatpush.bf16.msra.mxu2 %v1232_v21  ;;  %749 = vmatpush.bf16.msra.mxu3 %v1234_v22 }
  0x28   : > { %626 = vmatpush.bf16.msra.mxu0 %v1228_v23  ;;  %667 = vmatpush.bf16.msra.mxu1 %v1230_v24 }
  0x29   : > { %1090 = vmatmul.msk.bf16.vlgmr.msrb.gmra.mxu0 %vm279_vm0, %v1211_v10  ;;  %1106 = vmatmul.msk.bf16.vlgmr.msrb.gmra.mxu1 %vm279_vm0, %v1211_v10 }
  0x2a   : > { %1122 = vmatmul.msk.bf16.vlgmr.msrb.gmra.mxu2 %vm279_vm0, %v1211_v10  ;;  %1138 = vmatmul.msk.bf16.vlgmr.msrb.gmra.mxu3 %vm279_vm0, %v1211_v10 }
  0x39   : > { %1154 = vmatmul.msk.bf16.vlgmr.msra.gmra.mxu0 %vm279_vm0, %v1211_v10  ;;  %1170 = vmatmul.msk.bf16.vlgmr.msra.gmra.mxu1 %vm279_vm0, %v1211_v10 }
  0x3a   : > { %1186 = vmatmul.msk.bf16.vlgmr.msra.gmra.mxu2 %vm279_vm0, %v1211_v10  ;;  %1202 = vmatmul.msk.bf16.vlgmr.msra.gmra.mxu3 %vm279_vm0, %v1211_v10 }
  0x96   : > { %v292_v27 = vpop.f32.mrf.mxu0  ;;  %v335_v28 = vpop.f32.mrf.mxu1 }
  0x97   : > { %v293_v29 = vadd.f32 %v1279_v25, %v292_v27  ;;  %v336_v30 = vadd.f32 %v1280_v26, %v335_v28 }
  0x99   : > { %v297_v31 = vmul.f32 0.35355338, %v293_v29  ;;  %v340_v32 = vmul.f32 0.35355338, %v336_v30 }
  0x9b   : > { %v299_v35 = vpack.c.bf16 %v297_v31, %v297_v31  ;;  %v342_v36 = vpack.c.bf16 %v340_v32, %v340_v32 }
  0x9d   : > { %302 = vst.msk [vmem:[%s1496_s28] sm:$0xf] %vm301_vm1, %v299_v35  ;;  %v378_v37 = vpop.f32.mrf.mxu2  ;;  %v421_v38 = vpop.f32.mrf.mxu3 }
  0x9e   : > { %1043 = vst.msk [vmem:[%s1496_s28 + $0x8] sm:$0xf] %vm301_vm1, %v342_v36  ;;  %v379_v39 = vadd.f32 %v1281_v33, %v378_v37  ;;  %v422_v40 = vadd.f32 %v1282_v34, %v421_v38  ;;  %v294_v41 = vpop.f32.mrf.mxu0  ;;  %v337_v42 = vpop.f32.mrf.mxu1 }
  0x9f   : > { %v295_v43 = vadd.f32 %v1279_v25, %v294_v41  ;;  %v338_v44 = vadd.f32 %v1280_v26, %v337_v42 }
  0xa0   : > { %v383_v45 = vmul.f32 0.35355338, %v379_v39  ;;  %v426_v46 = vmul.f32 0.35355338, %v422_v40 }
  0xa1   : > { %v298_v47 = vmul.f32 0.35355338, %v295_v43  ;;  %v341_v48 = vmul.f32 0.35355338, %v338_v44 }
  0xa2   : > { %v385_v49 = vpack.c.bf16 %v383_v45, %v383_v45  ;;  %v428_v50 = vpack.c.bf16 %v426_v46, %v426_v46 }
  0xa3   : > { %v300_v51 = vpack.c.bf16 %v298_v47, %v298_v47  ;;  %v343_v52 = vpack.c.bf16 %v341_v48, %v341_v48 }
  0xa4   : > { %1059 = vst.msk [vmem:[%s1496_s28 + $0x10] sm:$0xf] %vm301_vm1, %v385_v49 }
  0xa5   : > { %1075 = vst.msk [vmem:[%s1496_s28 + $0x18] sm:$0xf] %vm301_vm1, %v428_v50  ;;  %v380_v55 = vpop.f32.mrf.mxu2  ;;  %v423_v56 = vpop.f32.mrf.mxu3 }
  0xa6   : > { %303 = vst.msk [vmem:[%s1496_s28 + $0x4] sm:$0xf] %vm301_vm1, %v300_v51  ;;  %v381_v57 = vadd.f32 %v1281_v33, %v380_v55  ;;  %v424_v58 = vadd.f32 %v1282_v34, %v423_v56  ;;  %v464_v59 = vpop.f32.mrf.mxu0  ;;  %v505_v60 = vpop.f32.mrf.mxu1  ;;  %v1289_v33 = vld [vmem:[%s1605_s2 + $0xa] ss:$0 sm:$0xff]  ;;  %v1290_v34 = vld [vmem:[%s1605_s2 + $0xb] ss:$0 sm:$0xff] }
  0xa7   : > { %1044 = vst.msk [vmem:[%s1496_s28 + $0xc] sm:$0xf] %vm301_vm1, %v343_v52  ;;  %v465_v61 = vadd.f32 %v1283_v53, %v464_v59  ;;  %v506_v62 = vadd.f32 %v1284_v54, %v505_v60 }
  0xa8   : > { %v384_v63 = vmul.f32 0.35355338, %v381_v57  ;;  %v427_v0 = vmul.f32 0.35355338, %v424_v58 }
  0xa9   : > { %v469_v1 = vpack.c.bf16 %v465_v61, %v465_v61  ;;  %v510_v4 = vpack.c.bf16 %v506_v62, %v506_v62 }
  0xaa   : > { %v386_v2 = vpack.c.bf16 %v384_v63, %v384_v63  ;;  %v429_v3 = vpack.c.bf16 %v427_v0, %v427_v0 }
  0xab   : > { %1091 = vst.msk [vmem:[%s1496_s28 + $0x20] sm:$0xf] %vm301_vm1, %v469_v1 }
  0xac   : > { %1060 = vst.msk [vmem:[%s1496_s28 + $0x14] sm:$0xf] %vm301_vm1, %v386_v2 }
  0xad   : > { %1076 = vst.msk [vmem:[%s1496_s28 + $0x1c] sm:$0xf] %vm301_vm1, %v429_v3  ;;  %v546_v7 = vpop.f32.mrf.mxu2  ;;  %v587_v8 = vpop.f32.mrf.mxu3 }
  0xae   : > { %1107 = vst.msk [vmem:[%s1496_s28 + $0x28] sm:$0xf] %vm301_vm1, %v510_v4  ;;  %v547_v9 = vadd.f32 %v1285_v5, %v546_v7  ;;  %v588_v10 = vadd.f32 %v1286_v6, %v587_v8  ;;  %v466_v11 = vpop.f32.mrf.mxu0  ;;  %v507_v12 = vpop.f32.mrf.mxu1 }
  0xaf   : > { %v467_v13 = vadd.f32 %v1283_v53, %v466_v11  ;;  %v508_v14 = vadd.f32 %v1284_v54, %v507_v12  ;;  %v791_v53 = vld [vmem:[%s1496_s28] sm:$0xff] (%p1383_p3)   ;;  %v795_v54 = vld [vmem:[%s1496_s28 + $0x8] sm:$0xff] (%p1383_p3)  }
  0xb0   : > { %v551_v15 = vpack.c.bf16 %v547_v9, %v547_v9  ;;  %v592_v16 = vpack.c.bf16 %v588_v10, %v588_v10  ;;  %792 = vst [vmem:[%s774_s29] sm:$0xff] (%p1383_p3), %v791_v53  }
  0xb1   : > { %v470_v17 = vpack.c.bf16 %v467_v13, %v467_v13  ;;  %v511_v18 = vpack.c.bf16 %v508_v14, %v508_v14  ;;  %796 = vst [vmem:[%s774_s29 + $0x8] sm:$0xff] (%p1383_p3), %v795_v54  }
  0xb2   : > { %1123 = vst.msk [vmem:[%s1496_s28 + $0x30] sm:$0xf] %vm301_vm1, %v551_v15 }
  0xb3   : > { %1139 = vst.msk [vmem:[%s1496_s28 + $0x38] sm:$0xf] %vm301_vm1, %v592_v16  ;;  %v799_v55 = vld [vmem:[%s1496_s28 + $0x10] sm:$0xff] (%p1383_p3)  }
  0xb4   : > { %1092 = vst.msk [vmem:[%s1496_s28 + $0x24] sm:$0xf] %vm301_vm1, %v470_v17  ;;  %v803_v56 = vld [vmem:[%s1496_s28 + $0x18] sm:$0xff] (%p1383_p3)  }
  0xb5   : > { %1108 = vst.msk [vmem:[%s1496_s28 + $0x2c] sm:$0xf] %vm301_vm1, %v511_v18  ;;  %v548_v21 = vpop.f32.mrf.mxu2  ;;  %v589_v22 = vpop.f32.mrf.mxu3 }
  0xb6   : > { %v549_v23 = vadd.f32 %v1285_v5, %v548_v21  ;;  %v590_v24 = vadd.f32 %v1286_v6, %v589_v22  ;;  %v628_v25 = vpop.f32.mrf.mxu0  ;;  %v669_v26 = vpop.f32.mrf.mxu1  ;;  %800 = vst [vmem:[%s774_s29 + $0x10] sm:$0xff] (%p1383_p3), %v799_v55  }
  0xb7   : > { %v629_v27 = vadd.f32 %v1287_v19, %v628_v25  ;;  %v670_v28 = vadd.f32 %v1288_v20, %v669_v26  ;;  %804 = vst [vmem:[%s774_s29 + $0x18] sm:$0xff] (%p1383_p3), %v803_v56  }
  0xb8   : > { %v552_v29 = vpack.c.bf16 %v549_v23, %v549_v23  ;;  %v593_v30 = vpack.c.bf16 %v590_v24, %v590_v24 }
  0xb9   : > { %v633_v31 = vpack.c.bf16 %v629_v27, %v629_v27  ;;  %v674_v32 = vpack.c.bf16 %v670_v28, %v670_v28 }
  0xba   : > { %1124 = vst.msk [vmem:[%s1496_s28 + $0x34] sm:$0xf] %vm301_vm1, %v552_v29 }
  0xbb   : > { %1140 = vst.msk [vmem:[%s1496_s28 + $0x3c] sm:$0xf] %vm301_vm1, %v593_v30  ;;  %v807_v57 = vld [vmem:[%s1496_s28 + $0x20] sm:$0xff] (%p1383_p3)  }
  0xbc   : > { %1155 = vst.msk [vmem:[%s1496_s28 + $0x40] sm:$0xf] %vm301_vm1, %v633_v31  ;;  %v811_v58 = vld [vmem:[%s1496_s28 + $0x28] sm:$0xff] (%p1383_p3)  }
  0xbd   : > { %1171 = vst.msk [vmem:[%s1496_s28 + $0x48] sm:$0xf] %vm301_vm1, %v674_v32  ;;  %v710_v35 = vpop.f32.mrf.mxu2  ;;  %v751_v36 = vpop.f32.mrf.mxu3 }
  0xbe   : > { %v711_v37 = vadd.f32 %v1289_v33, %v710_v35  ;;  %v752_v38 = vadd.f32 %v1290_v34, %v751_v36  ;;  %v630_v39 = vpop.f32.mrf.mxu0  ;;  %v671_v40 = vpop.f32.mrf.mxu1  ;;  %808 = vst [vmem:[%s774_s29 + $0x40] sm:$0xff] (%p1383_p3), %v807_v57  }
  0xbf   : > { %v631_v41 = vadd.f32 %v1287_v19, %v630_v39  ;;  %v672_v42 = vadd.f32 %v1288_v20, %v671_v40  ;;  %812 = vst [vmem:[%s774_s29 + $0x48] sm:$0xff] (%p1383_p3), %v811_v58  }
  0xc0   : > { %v715_v43 = vpack.c.bf16 %v711_v37, %v711_v37  ;;  %v756_v44 = vpack.c.bf16 %v752_v38, %v752_v38 }
  0xc1   : > { %v634_v45 = vpack.c.bf16 %v631_v41, %v631_v41  ;;  %v675_v46 = vpack.c.bf16 %v672_v42, %v672_v42  ;;  %v815_v59 = vld [vmem:[%s1496_s28 + $0x30] sm:$0xff] (%p1383_p3)  }
  0xc2   : > { %1187 = vst.msk [vmem:[%s1496_s28 + $0x50] sm:$0xf] %vm301_vm1, %v715_v43  ;;  %v819_v60 = vld [vmem:[%s1496_s28 + $0x38] sm:$0xff] (%p1383_p3)  }
  0xc3   : > { %1203 = vst.msk [vmem:[%s1496_s28 + $0x58] sm:$0xf] %vm301_vm1, %v756_v44 }
  0xc4   : > { %1156 = vst.msk [vmem:[%s1496_s28 + $0x44] sm:$0xf] %vm301_vm1, %v634_v45 }
  0xc5   : > { %1172 = vst.msk [vmem:[%s1496_s28 + $0x4c] sm:$0xf] %vm301_vm1, %v675_v46  ;;  %v712_v47 = vpop.f32.mrf.mxu2  ;;  %v753_v48 = vpop.f32.mrf.mxu3 }
  0xc6   : > { %v713_v49 = vadd.f32 %v1289_v33, %v712_v47  ;;  %v754_v50 = vadd.f32 %v1290_v34, %v753_v48  ;;  %816 = vst [vmem:[%s774_s29 + $0x50] sm:$0xff] (%p1383_p3), %v815_v59  }
  0xc7   : > { %767 = sbr.rel (!%p1383_p3) target bundleno = 212 (0xd4), region = 36  ;;  %820 = vst [vmem:[%s774_s29 + $0x58] sm:$0xff] (%p1383_p3), %v819_v60  }
  0xc8   : > { %v716_v51 = vpack.c.bf16 %v713_v49, %v713_v49  ;;  %v757_v52 = vpack.c.bf16 %v754_v50, %v754_v50 }
  0xca   : > { %1188 = vst.msk [vmem:[%s1496_s28 + $0x54] sm:$0xf] %vm301_vm1, %v716_v51 }
  0xcb   : > { %1204 = vst.msk [vmem:[%s1496_s28 + $0x5c] sm:$0xf] %vm301_vm1, %v757_v52  ;;  %v823_v61 = vld [vmem:[%s1496_s28 + $0x40] sm:$0xff] (%p1383_p3)  }
  0xcc   : > { %v827_v62 = vld [vmem:[%s1496_s28 + $0x48] sm:$0xff]   ;;  %824 = vst [vmem:[%s774_s29 + $0x80] sm:$0xff] %v823_v61  }
  0xcd   : > { %828 = vst [vmem:[%s774_s29 + $0x88] sm:$0xff] %v827_v62  }
  0xd1   : > { %v831_v63 = vld [vmem:[%s1496_s28 + $0x50] sm:$0xff]  }
  0xd2   : > { %v835_v0 = vld [vmem:[%s1496_s28 + $0x58] sm:$0xff]   ;;  %832 = vst [vmem:[%s774_s29 + $0x90] sm:$0xff] %v831_v63  }
  0xd3   : > { %836 = vst [vmem:[%s774_s29 + $0x98] sm:$0xff] %v835_v0  }
  0xd4 PF: > { %s13_s16 = sadd.s32 1, %s1329_s16   ;;  %s1608_s12 = smov %s1317_s13 }
  0xd5   : > { %p10_p9 = scmp.ge.s32.totalorder %s13_s16, 4   ;;  %s1609_s13 = smov %s1392_s22 }
  0xd6   : > { %s1610_s14 = smov %s1325_s15  ;;  %s1611_s15 = smov %s1613_s18 }
  0xd7   :  { %12 = sbr.rel (!%p10_p9) target bundleno = 3 (0x3), region = 142 }

// kernel: gpt_forward.17
= control target key start
LH: loop header
LB: loop body
LE: loop exit
PB: predicated region body
PF: predicated region fallthrough
CT: control target
= control target key end

     0   :  { %8 = vsyncpa [#allocation3], 0  ;;  %s717_s0 = inlined_call_operand.vmem [shape: bf16[2,16,32], index: 0, kind: input, shape index: {}]   ;;  %s718_s1 = inlined_call_operand.vmem [shape: bf16[32,64], index: 1, kind: input, shape index: {}]   ;;  %s719_s2 = inlined_call_operand.vmem [shape: f32[1,64], index: 2, kind: input, shape index: {}]   ;;  %s720_s3 = inlined_call_operand.hbm [shape: f32[2,16,64], index: 3, kind: output, shape index: {}]  }
   0x1   :  { %10 = vsyncpa [#allocation3 + $0x1], 0  ;;  %s611_s12 = smov 0   ;;  %s613_s13 = smov 0  }
   0x2   :  { %s615_s14 = smov 0   ;;  %s617_s15 = smov 0  }
   0x3   :  { %s619_s16 = smov 0   ;;  %s621_s17 = smov 0  }
   0x4 LB: > { %s418_s18 = sadd.s32 4294967295, %s587_s17   ;;  %s419_s19 = sadd.s32 4294967294, %s587_s17   ;;  %s587_s17 = sphi %s621_s17, %s16_s17   ;;  %s583_s16 = sphi %s619_s16, %s727_s16   ;;  %s579_s15 = sphi %s617_s15, %s726_s15   ;;  %s575_s14 = sphi %s615_s14, %s725_s14   ;;  %s571_s13 = sphi %s613_s13, %s724_s13   ;;  %s567_s12 = sphi %s611_s12, %s723_s12  }
   0x5   : > { %s31_s20 = sadd.s32 1, %s583_s16  ;;  %s126_s21 = sadd.s32 1, %s575_s14 }
   0x6   : > { %p33_p0 = scmp.ge.s32.totalorder %s31_s20, 2  ;;  %p136_p1 = scmp.ne.s32.totalorder %s575_s14, %s571_s13 }
   0x7   : > { %p137_p2 = scmp.eq.s32.totalorder %s418_s18, 1  ;;  %p142_p3 = scmp.ne.s32.totalorder %s571_s13, %s567_s12 }
   0x8   : > { %s729_s20 = smov (%p33_p0, %s31_s20), 0  ;;  %p143_p5 = scmp.eq.s32.totalorder %s419_s19, 1 }
   0x9   : > { %p651_p4 = por %p137_p2, %p136_p1  ;;  %s119_s23 = ssub.s32 %s583_s16, %s729_s20 }
   0xa   : > { %p424_p6 = scmp.ge.s32.totalorder %s587_s17, 1  ;;  %p124_p7 = scmp.eq.s32.totalorder %s119_s23, 0 }
   0xb   : > { %p658_p8 = por %p143_p5, %p142_p3  ;;  %p187_p9 = scmp.lt.s32.totalorder %s587_s17, 3 }
   0xc   : > { %s664_s25 = scalar_select %p124_p7, %s575_s14, %s126_s21  }
   0xd   : > { %p188_p10 = pnand %p424_p6, %p187_p9 }
   0xe   : > { %p223_p11 = scmp.lt.s32.totalorder (!%p188_p10), %s579_s15, 1  ;;  %s219_s8 = sand.u32 (!%p188_p10), 1, %s571_s13  }
   0xf   : > { %191 = sbr.rel (%p188_p10) target bundleno = 168 (0xa8), region = 32  ;;  %s425_s9 = sshll.u32 (!%p188_p10), %s219_s8, 4 }
  0x10   : > { %s450_s18 = sshll.u32 (!%p188_p10), %s579_s15, 4  ;;  %s221_s26 = scalar_lea.vmem (!%p188_p10), [#allocation2], %s425_s9 }
  0x11   : > { %s304_s23 = scalar_lea.hbm (!%p188_p10), %s720_s3, %s450_s18  ;;  %s305_s27 = sshll.u32 (!%p188_p10), %s221_s26, 4  ;;  %s306_s27 = int_to_ptr.vmem [resolvable:$true] %s305_s27 }
  0x12   : > { %s307_s28 = sshll.u32 (!%p188_p10), %s304_s23, 4  ;;  %s290_s29 = scalar_lea.sflag (!%p188_p10), [#allocation3], %s219_s8  ;;  %s308_s28 = int_to_ptr.hbm [resolvable:$true] %s307_s28 }
  0x13   : > { %s529_s6 = scalar_lea.hbm (!%p188_p10), %s720_s3, 32 }
  0x14   : > { %v449_v0 = vld [vmem:[%s718_s1 + $0x8] sm:$0xff]  ;;  %v448_v1 = vld [vmem:[%s718_s1] sm:$0xff]  ;;  %s224_s30 = scalar_select %p223_p11, %s579_s15, 1  ;;  %vm268_vm0 = vcmask 261120   ;;  %vm286_vm1 = vcmask 523264  }
  0x15   : > { %278 = vmatpush.bf16.msra.mxu0 %v449_v0  ;;  %v508_v3 = vld [vmem:[%s719_s2] ss:$0 sm:$0xff] }
  0x16   : > { %s446_s4 = sshll.u32 %s224_s30, 3  ;;  %s523_s30 = sshra.s32 %s308_s28, 4  ;;  %s524_s30 = int_to_ptr.hbm [resolvable:$true] %s523_s30 }
  0x17   : > { %s230_s7 = scalar_lea.vmem %s717_s0, %s446_s4  ;;  %s525_s15 = scalar_lea.hbm %s524_s30, 16 }
  0x18   : > { %v447_v2 = vld [vmem:[%s230_s7] sm:$0xff]  ;;  %p526_p12 = scmp.ne.s32.totalorder %s524_s30, %s525_s15  ;;  %p530_p1 = scmp.lt.s32.totalorder %s524_s30, %s720_s3 }
  0x19   : > { %279 = vmatpush.bf16.msra.mxu0 %v448_v1  ;;  %p531_p2 = scmp.lt.s32.totalorder %s529_s6, %s525_s15 }
  0x1a   : > { %p527_p13 = pnand %p526_p12, %p651_p4 }
  0x1b   : > { %p532_p3 = por %p531_p2, %p530_p1 }
  0x1c   : > { %440 = vmatmul.msk.bf16.vlgmr.msra.gmra.mxu0 %vm268_vm0, %v447_v2  ;;  %p528_p0 = pneg %p527_p13 }
  0x1e   : > { %p533_p5 = pnand %p532_p3, %p528_p0 }
  0x99   : > { %v281_v4 = vpop.f32.mrf.mxu0 }
  0x9a   : > { %v282_v5 = vadd.f32 %v508_v3, %v281_v4 }
  0x9c   : > { %287 = vst.msk [vmem:[%s221_s26] sm:$0xff] %vm286_vm1, %v282_v5 }
  0xa1   : > { %v283_v6 = vpop.f32.mrf.mxu0 }
  0xa2   : > { %v284_v7 = vadd.f32 %v508_v3, %v283_v6 }
  0xa4   : > { %288 = vst.msk [vmem:[%s221_s26 + $0x8] sm:$0xff] %vm286_vm1, %v284_v7 }
  0xa5   : > { %536 = shalt.err (!%p533_p5)
}
  0xa6   : > { %s589_s8 = smov 128   ;;  %s590_s10 = smov 8  }
  0xa7   : > { %451 = dma.vmem_to_hbm [thread:$0]  (%p651_p4), %s306_s27, 256, %s308_s28, %s290_s29, %s589_s8, %s589_s8, %s590_s10  }
  0xa8 PF: > { %p457_p6 = scmp.ge.s32.totalorder %s587_s17, 2  ;;  %s322_s11 = sand.u32 1, %s567_s12  }
  0xa9   : > { %s323_s18 = scalar_lea.sflag [#allocation3], %s322_s11 }
  0xaa   : > { %p454_p7 = pnand %p457_p6, %p658_p8 }
  0xac   : > { %p455_p9 = pneg %p454_p7 }
  0xae   : > { %562 = dma.done.wait (%p455_p9), %s323_s18, 256  }
  0xaf   : > { %564 = vsyncadd (%p455_p9), %s323_s18, 4294967040  ;;  %s16_s17 = sadd.s32 1, %s587_s17   ;;  %s723_s12 = smov %s571_s13 }
  0xb0   : > { %p13_p10 = scmp.ge.s32.totalorder %s16_s17, 4   ;;  %s724_s13 = smov %s575_s14 }
  0xb1   : > { %s725_s14 = smov %s664_s25  ;;  %s726_s15 = smov %s583_s16 }
  0xb2   : > { %s727_s16 = smov %s729_s20  ;;  %15 = sbr.rel (!%p13_p10) target bundleno = 4 (0x4), region = 73 }
  0xb7   :  { %329 = vsyncpa [#allocation3], 1 }
  0xb8   :  { %331 = vsyncpa [#allocation3 + $0x1], 1 }

</bundles_post_ra>
